<compile_context>
chip_gen: v7x
topology: tpu7x:2x2x1
jax: 0.10.0
libtpu: 0.0.40
codegen_flags: <defaults>
</compile_context>

<pallas_src>
import math

import jax
import jax.numpy as jnp
from jax import lax
from jax.experimental import pallas as pl
from jax.experimental.pallas import tpu as pltpu

_EPS = 1e-5
_MAX_FOLDED_LANE = 512        # max folded lane width (lcm(C, 128))
_MAX_TILE_ROWS = 16384        # hard cap on rows per grid step


def _round_up(v, m):
    return ((v + m - 1) // m) * m


def _tpu_hw_info():
    """(vmem_capacity_bytes, num_tensorcores) with conservative fallbacks."""
    vmem_cap = 64 * 1024 * 1024            # v7x has the smallest VMEM per TC
    num_cores = 1
    try:
        info = pltpu.get_tpu_info()
        cap = getattr(info, "vmem_capacity_bytes", None)
        if cap:
            vmem_cap = int(cap)
        for attr in ("num_cores", "num_tensorcores", "tensorcores_per_chip",
                     "core_count"):
            v = getattr(info, attr, None)
            if isinstance(v, int) and v > 0:
                num_cores = v
                break
    except Exception:
        pass
    if num_cores == 1:
        try:
            kind = jax.devices()[0].device_kind.lower()
            if "v7" in kind:               # v7x: 2 TensorCores per chip
                num_cores = 2
        except Exception:
            pass
    return vmem_cap, num_cores


def _choose_tile_rows(n_rows, lane, itemsize, tile_budget, num_cores):
    """Largest row tile within the VMEM budget; balanced split on 2-TC chips."""
    sub = 8 * max(1, 4 // itemsize)        # sublane multiple: 8 f32 / 16 bf16
    if n_rows <= sub:
        return n_rows                      # single full-extent block
    # Double-buffered in+out tiles in x's dtype plus ~3 f32 working copies/row.
    per_row = lane * (4 * itemsize + 12)
    t = max(sub, tile_budget // per_row)
    t = min(t, _MAX_TILE_ROWS)
    if num_cores > 1:
        # Target >= 2*num_cores near-equal tiles so both TensorCores get work.
        # Single-core chips skip this: extra grid steps are pure overhead.
        t = min(t, _round_up(pl.cdiv(n_rows, 2 * num_cores), sub))
    t = min(t, n_rows)
    return max(sub, (t // sub) * sub)


def _ln_kernel(x_ref, w_ref, b_ref, o_ref):
    # Fallback path: x_ref (tile_rows, C); w_ref / b_ref (1, C).
    x = x_ref[...].astype(jnp.float32)
    mu = jnp.mean(x, axis=-1, keepdims=True)
    xc = x - mu
    var = jnp.mean(xc * xc, axis=-1, keepdims=True)      # biased variance
    y = xc * lax.rsqrt(var + _EPS)
    w = w_ref[...].astype(jnp.float32)
    b = b_ref[...].astype(jnp.float32)
    o_ref[...] = (y * w + b).astype(o_ref.dtype)


def _ln_folded_kernel(x_ref, w_ref, b_ref, g_ref, o_ref):
    # Lane-dense path: x_ref (tile_rows, lane) packs k independent groups of
    # width C along the 128-wide lane dimension.  g_ref is the (lane, lane)
    # block-diagonal averaging matrix (k diagonal blocks filled with 1/C), so
    # the segmented means / variances are two MXU matmuls: no sub-vreg lane
    # slices, no concatenates, no masked stores.
    x = x_ref[...].astype(jnp.float32)
    g = g_ref[...]
    mu = jnp.dot(x, g, preferred_element_type=jnp.float32,
                 precision=lax.Precision.HIGHEST)
    xc = x - mu
    var = jnp.dot(xc * xc, g, preferred_element_type=jnp.float32,
                  precision=lax.Precision.HIGHEST)        # biased variance
    y = xc * lax.rsqrt(var + _EPS)
    w = w_ref[...].astype(jnp.float32)
    b = b_ref[...].astype(jnp.float32)
    o_ref[...] = (y * w + b).astype(o_ref.dtype)


@jax.jit
def with_bias_layernorm(x, weight, bias):
    """x: (..., C); weight, bias: (C,). LayerNorm over the last axis."""
    orig_shape = x.shape
    c = orig_shape[-1]
    x2 = x.reshape(-1, c)
    r = x2.shape[0]
    itemsize = jnp.dtype(x.dtype).itemsize

    vmem_cap, num_cores = _tpu_hw_info()
    vmem_limit = min(vmem_cap // 2, 64 * 1024 * 1024)      # scoped VMEM limit
    tile_budget = min(vmem_limit // 2, 24 * 1024 * 1024)   # in/out tile budget

    # Lane folding: pack k rows into a lane-dense row of width lane=lcm(C,128)
    # so loads / stores are unmasked full-width vregs and DMAs.
    lane_full = (c * 128) // math.gcd(c, 128)
    k = lane_full // c
    fold = (k > 1) and (lane_full <= _MAX_FOLDED_LANE) and (r % k == 0)

    if fold:
        rows, lane = r // k, lane_full
        xk = x2.reshape(rows, lane)                    # free row-major reshape
        wk = jnp.tile(weight.reshape(1, c), (1, k))
        bk = jnp.tile(bias.reshape(1, c), (1, k))
        grp = jnp.arange(lane) // c
        g = (grp[:, None] == grp[None, :]).astype(jnp.float32) * (1.0 / c)
        kernel = _ln_folded_kernel
        extra_in_specs = [pl.BlockSpec((lane, lane), lambda i: (0, 0))]
        extra_args = (g,)
        flops = 4 * rows * lane * lane + 6 * rows * lane
        bytes_accessed = 2 * r * c * itemsize + lane * lane * 4
    else:
        rows, lane = r, c
        xk = x2
        wk = weight.reshape(1, c)
        bk = bias.reshape(1, c)
        kernel = _ln_kernel
        extra_in_specs = []
        extra_args = ()
        flops = 10 * r * c
        bytes_accessed = 2 * r * c * itemsize

    tile_rows = _choose_tile_rows(rows, lane, itemsize, tile_budget, num_cores)
    grid = (pl.cdiv(rows, tile_rows),)   # ragged last block: no padding needed

    out = pl.pallas_call(
        kernel,
        out_shape=jax.ShapeDtypeStruct((rows, lane), x.dtype),
        grid_spec=pltpu.PrefetchScalarGridSpec(
            num_scalar_prefetch=0,
            grid=grid,
            in_specs=[
                pl.BlockSpec((tile_rows, lane), lambda i: (i, 0)),
                pl.BlockSpec((1, lane), lambda i: (0, 0)),
                pl.BlockSpec((1, lane), lambda i: (0, 0)),
            ] + extra_in_specs,
            out_specs=pl.BlockSpec((tile_rows, lane), lambda i: (i, 0)),
        ),
        compiler_params=pltpu.CompilerParams(
            dimension_semantics=("parallel",),
            vmem_limit_bytes=vmem_limit,
        ),
        cost_estimate=pl.CostEstimate(          # advisory only
            flops=flops,
            transcendentals=r,
            bytes_accessed=bytes_accessed,
        ),
    )(xk, wk, bk, *extra_args)

    return out.reshape(orig_shape)


def _reference(x, weight, bias):
    x = x.astype(jnp.float32)
    mu = jnp.mean(x, axis=-1, keepdims=True)
    var = jnp.mean((x - mu) ** 2, axis=-1, keepdims=True)
    return (x - mu) / jnp.sqrt(var + _EPS) * weight + bias


if __name__ == "__main__":
    key = jax.random.PRNGKey(0)

    # Module usage in FDFA: normalized_shape == channel count C; conv NCHW
    # feature map permuted to channels-last tokens (B, HW, C).
    B, H, W, C = 2, 16, 16, 32
    x_nchw = jax.random.normal(key, (B, C, H, W), dtype=jnp.float32)
    x = jnp.transpose(x_nchw, (0, 2, 3, 1)).reshape(B, H * W, C)

    # Deterministic parameter init per WithBias_LayerNorm.__init__:
    weight = jnp.ones((C,), dtype=jnp.float32)
    bias = jnp.zeros((C,), dtype=jnp.float32)

    out = jax.block_until_ready(with_bias_layernorm(x, weight, bias))
    ref = _reference(x, weight, bias)
    assert out.shape == x.shape
    assert jnp.allclose(out, ref, atol=1e-4, rtol=1e-4)

    # C=48 now folds via lane=lcm(48,128)=384, k=8 (lane-dense path).
    k2, k3, k4 = jax.random.split(jax.random.PRNGKey(1), 3)
    x2 = jax.random.normal(k2, (4, 22, 48), dtype=jnp.float32)   # 88 rows % 8 == 0
    w2 = jax.random.normal(k3, (48,), dtype=jnp.float32)
    b2 = jax.random.normal(k4, (48,), dtype=jnp.float32)
    out2 = jax.block_until_ready(with_bias_layernorm(x2, w2, b2))
    assert jnp.allclose(out2, _reference(x2, w2, b2), atol=1e-4, rtol=1e-4)

    # Unfolded fallback (lcm(200,128) too large) with a ragged last grid block.
    k5, k6, k7 = jax.random.split(jax.random.PRNGKey(2), 3)
    x3 = jax.random.normal(k5, (3, 21, 200), dtype=jnp.float32)
    w3 = jax.random.normal(k6, (200,), dtype=jnp.float32)
    b3 = jax.random.normal(k7, (200,), dtype=jnp.float32)
    out3 = jax.block_until_ready(with_bias_layernorm(x3, w3, b3))
    assert jnp.allclose(out3, _reference(x3, w3, b3), atol=1e-4, rtol=1e-4)

    print("KERNEL_OK")
</pallas_src>

<mosaic_0001>
module attributes {stable_mosaic.version = 11 : i64} {
  func.func @_ln_folded_kernel(%arg0: i32, %arg1: memref<128x128xf32, #tpu.memory_space<vmem>>, %arg2: memref<1x128xf32, #tpu.memory_space<vmem>>, %arg3: memref<1x128xf32, #tpu.memory_space<vmem>>, %arg4: memref<128x128xf32, #tpu.memory_space<vmem>>, %arg5: memref<128x128xf32, #tpu.memory_space<vmem>>) attributes {dimension_semantics = [#tpu.dimension_semantics<parallel>], iteration_bounds = array<i64: 1>, scalar_prefetch = 0 : i64, scratch_operands = 0 : i64, tpu.core_type = #tpu.core_type<tc>, window_params = [{transform_indices = @transform_0, window_bounds = array<i64: 128, 128>}, {pipeline_mode = #tpu.pipeline_mode<synchronous>, transform_indices = @transform_1, window_bounds = array<i64: 1, 128>}, {pipeline_mode = #tpu.pipeline_mode<synchronous>, transform_indices = @transform_2, window_bounds = array<i64: 1, 128>}, {pipeline_mode = #tpu.pipeline_mode<synchronous>, transform_indices = @transform_3, window_bounds = array<i64: 128, 128>}, {transform_indices = @transform_4, window_bounds = array<i64: 128, 128>}]} {
    %c0 = arith.constant 0 : index
    %c0_0 = arith.constant 0 : index
    %0 = vector.load %arg1[%c0, %c0_0] : memref<128x128xf32, #tpu.memory_space<vmem>>, vector<128x128xf32>
    %c0_1 = arith.constant 0 : index
    %c0_2 = arith.constant 0 : index
    %1 = vector.load %arg4[%c0_1, %c0_2] : memref<128x128xf32, #tpu.memory_space<vmem>>, vector<128x128xf32>
    %cst = arith.constant dense<0.000000e+00> : vector<128x128xf32>
    %2 = tpu.matmul %0, %1, %cst {dimension_numbers = #tpu.dot_dimension_numbers<[1], [0], [0], [1], [0, 0, 1, 1], [], []>, precision = #tpu.contract_precision<fp32>} : vector<128x128xf32>, vector<128x128xf32>, vector<128x128xf32> -> vector<128x128xf32>
    %3 = arith.subf %0, %2 : vector<128x128xf32>
    %4 = arith.mulf %3, %3 : vector<128x128xf32>
    %cst_3 = arith.constant dense<0.000000e+00> : vector<128x128xf32>
    %5 = tpu.matmul %4, %1, %cst_3 {dimension_numbers = #tpu.dot_dimension_numbers<[1], [0], [0], [1], [0, 0, 1, 1], [], []>, precision = #tpu.contract_precision<fp32>} : vector<128x128xf32>, vector<128x128xf32>, vector<128x128xf32> -> vector<128x128xf32>
    %cst_4 = arith.constant 9.99999974E-6 : f32
    %6 = vector.broadcast %cst_4 : f32 to vector<128x128xf32>
    %7 = arith.addf %5, %6 : vector<128x128xf32>
    %8 = math.rsqrt %7 : vector<128x128xf32>
    %9 = arith.mulf %3, %8 : vector<128x128xf32>
    %c0_5 = arith.constant 0 : index
    %c0_6 = arith.constant 0 : index
    %10 = vector.load %arg2[%c0_5, %c0_6] : memref<1x128xf32, #tpu.memory_space<vmem>>, vector<1x128xf32>
    %c0_7 = arith.constant 0 : index
    %c0_8 = arith.constant 0 : index
    %11 = vector.load %arg3[%c0_7, %c0_8] : memref<1x128xf32, #tpu.memory_space<vmem>>, vector<1x128xf32>
    %12 = vector.broadcast %10 : vector<1x128xf32> to vector<128x128xf32>
    %13 = arith.mulf %9, %12 : vector<128x128xf32>
    %14 = vector.broadcast %11 : vector<1x128xf32> to vector<128x128xf32>
    %15 = arith.addf %13, %14 : vector<128x128xf32>
    %c0_9 = arith.constant 0 : index
    %c0_10 = arith.constant 0 : index
    %16 = vector.load %arg5[%c0_9, %c0_10] : memref<128x128xf32, #tpu.memory_space<vmem>>, vector<128x128xf32>
    tpu.vector_store %arg5[%c0_9, %c0_10], %15 {strides = array<i32>} : memref<128x128xf32, #tpu.memory_space<vmem>>, vector<128x128xf32>,
    return
  }
  func.func @transform_0(%arg0: i32) -> (i32, i32) {
    %c0_i32 = arith.constant 0 : i32
    %c0_i32_0 = arith.constant 0 : i32
    return %arg0, %c0_i32 : i32, i32
  }
  func.func @transform_1(%arg0: i32) -> (i32, i32) {
    %c0_i32 = arith.constant 0 : i32
    %c0_i32_0 = arith.constant 0 : i32
    %c0_i32_1 = arith.constant 0 : i32
    return %c0_i32, %c0_i32_0 : i32, i32
  }
  func.func @transform_2(%arg0: i32) -> (i32, i32) {
    %c0_i32 = arith.constant 0 : i32
    %c0_i32_0 = arith.constant 0 : i32
    %c0_i32_1 = arith.constant 0 : i32
    return %c0_i32, %c0_i32_0 : i32, i32
  }
  func.func @transform_3(%arg0: i32) -> (i32, i32) {
    %c0_i32 = arith.constant 0 : i32
    %c0_i32_0 = arith.constant 0 : i32
    %c0_i32_1 = arith.constant 0 : i32
    return %c0_i32, %c0_i32_0 : i32, i32
  }
  func.func @transform_4(%arg0: i32) -> (i32, i32) {
    %c0_i32 = arith.constant 0 : i32
    %c0_i32_0 = arith.constant 0 : i32
    return %arg0, %c0_i32 : i32, i32
  }
}

</mosaic_0001>

<bundles_post_ra>
// kernel: with_bias_layernorm.1
= control target key start
LH: loop header
LB: loop body
LE: loop exit
PB: predicated region body
PF: predicated region fallthrough
CT: control target
= control target key end

     0   :  { %s5753_s3 = inlined_call_operand.vmem [shape: f32[128,128], index: 3, kind: input, shape index: {}]   ;;  %s5754_s0 = inlined_call_operand.vmem [shape: f32[128,128], index: 0, kind: input, shape index: {}]   ;;  %s5755_s1 = inlined_call_operand.vmem [shape: f32[1,128], index: 1, kind: input, shape index: {}]   ;;  %s5756_s2 = inlined_call_operand.vmem [shape: f32[1,128], index: 2, kind: input, shape index: {}]   ;;  %s5757_s4 = inlined_call_operand.vmem [shape: f32[128,128], index: 4, kind: output, shape index: {}]  }
   0x1   :  { %v33_v0 = vld [vmem:[%s5753_s3] sm:$0xff]  ;;  %v34_v1 = vld [vmem:[%s5753_s3 + $0x8] sm:$0xff]  ;;  %v35_v2 = vld [vmem:[%s5753_s3 + $0x10] sm:$0xff] }
   0x2   :  { %v50_v3 = vand.u32 4294901760, %v33_v0  ;;  %v53_v4 = vand.u32 4294901760, %v34_v1  ;;  %v36_v5 = vld [vmem:[%s5753_s3 + $0x18] sm:$0xff]  ;;  %v56_v6 = vand.u32 4294901760, %v35_v2  ;;  %v4441_v7 = vld [vmem:[%s5753_s3 + $0x20] sm:$0xff]  ;;  %v4446_v8 = vld [vmem:[%s5753_s3 + $0x28] sm:$0xff] }
   0x3   :  { %v59_v9 = vand.u32 4294901760, %v36_v5  ;;  %v62_v11 = vand.u32 4294901760, %v4441_v7  ;;  %v65_v12 = vand.u32 4294901760, %v4446_v8  ;;  %v4457_v14 = vld [vmem:[%s5753_s3 + $0x30] sm:$0xff]  ;;  %v4462_v15 = vld [vmem:[%s5753_s3 + $0x38] sm:$0xff]  ;;  %v4468_v16 = vld [vmem:[%s5754_s0] sm:$0xff] }
   0x4   :  { %v4448_v10 = vpack.c.bf16 %v53_v4, %v50_v3  ;;  %5878 = vst [vmem:[#allocation4_spill] sm:$0xff] %v4468_v16  ;;  %v4473_v17 = vld [vmem:[%s5754_s0 + $0x8] sm:$0xff]  ;;  %v4478_v18 = vand.u32 4294901760, %v4468_v16  ;;  %v68_v20 = vand.u32 4294901760, %v4457_v14  ;;  %v71_v21 = vand.u32 4294901760, %v4462_v15  ;;  %v4493_v22 = vld [vmem:[%s5753_s3 + $0x40] sm:$0xff] }
   0x5   :  { %v4452_v13 = vpack.c.bf16 %v59_v9, %v56_v6  ;;  %5879 = vst [vmem:[#allocation5_spill] sm:$0xff] %v4473_v17  ;;  %v4486_v19 = vpack.c.bf16 %v65_v12, %v62_v11  ;;  %v4499_v23 = vld [vmem:[%s5753_s3 + $0x48] sm:$0xff]  ;;  %v4506_v25 = vand.u32 4294901760, %v4473_v17  ;;  %v4511_v26 = vld [vmem:[%s5754_s0 + $0x10] sm:$0xff]  ;;  %v4516_v27 = vld [vmem:[%s5754_s0 + $0x18] sm:$0xff]  ;;  %v74_v28 = vand.u32 4294901760, %v4493_v22 }
   0x6   :  { %5876 = vst [vmem:[#allocation2_spill] sm:$0xff] %v4448_v10  ;;  %3810 = vmatprep.subr.bf16.mxu0 %v4448_v10  ;;  %4002 = vmatprep.subr.bf16.mxu1 %v4448_v10  ;;  %v4503_v24 = vsub.f32 %v4468_v16, %v4478_v18  ;;  %5882 = vst [vmem:[#allocation8_spill] sm:$0xff] %v4511_v26  ;;  %v4527_v30 = vpack.c.bf16 %v71_v21, %v68_v20  ;;  %v5772_v31 = vand.u32 4294901760, %v4499_v23  ;;  %v4533_v32 = vld [vmem:[%s5753_s3 + $0x50] sm:$0xff]  ;;  %v4543_v35 = vld [vmem:[%s5753_s3 + $0x58] sm:$0xff] }
   0x7   :  { %5877 = vst [vmem:[#allocation3_spill] sm:$0xff] %v4452_v13  ;;  %3812 = vmatpush3.bf16.msra.mxu0 %v4448_v10  ;;  %4004 = vmatpush3.bf16.msra.mxu1 %v4448_v10  ;;  %5880 = vst [vmem:[#allocation6_spill] sm:$0xff] %v4486_v19  ;;  %v4535_v33 = vsub.f32 %v33_v0, %v50_v3  ;;  %v4537_v34 = vsub.f32 %v34_v1, %v53_v4  ;;  %v4553_v38 = vand.u32 4294901760, %v4511_v26  ;;  %v4565_v42 = vld [vmem:[%s5753_s3 + $0x60] sm:$0xff]  ;;  %v4570_v43 = vld [vmem:[%s5753_s3 + $0x68] sm:$0xff] }
   0x8   :  { %3814 = vmatprep.subr.bf16.mxu0 %v4452_v13  ;;  %4006 = vmatprep.subr.bf16.mxu1 %v4452_v13  ;;  %5881 = vst [vmem:[#allocation7_spill] sm:$0xff] %v4503_v24  ;;  %5883 = vst [vmem:[#allocation9_spill] sm:$0xff] %v4516_v27  ;;  %v5759_v29 = vand.u32 4294901760, %v4503_v24  ;;  %v4550_v37 = vsub.f32 %v4473_v17, %v4506_v25  ;;  %v4556_v39 = vand.u32 4294901760, %v4516_v27  ;;  %v5764_v41 = vand.u32 4294901760, %v4533_v32  ;;  %v4584_v47 = vld [vmem:[%s5753_s3 + $0x70] sm:$0xff] }
   0x9   :  { %5884 = vst [vmem:[#allocation10_spill] sm:$0xff] %v4527_v30  ;;  %v4558_v40 = vsub.f32 %v35_v2, %v56_v6  ;;  %v4578_v45 = vpack.c.bf16 %v5772_v31, %v74_v28  ;;  %v5763_v46 = vand.u32 4294901760, %v4543_v35  ;;  %v5762_v48 = vand.u32 4294901760, %v4535_v33  ;;  %v4592_v50 = vld [vmem:[%s5754_s0 + $0x20] sm:$0xff]  ;;  %v4597_v51 = vld [vmem:[%s5754_s0 + $0x28] sm:$0xff]  ;;  %v4603_v52 = vld [vmem:[%s5753_s3 + $0x78] sm:$0xff] }
   0xa   :  { %v133_v36 = vsub.f32 %v4503_v24, %v5759_v29  ;;  %5885 = vst [vmem:[#allocation11_spill] sm:$0xff] %v4550_v37  ;;  %v4587_v49 = vsub.f32 %v36_v5, %v59_v9  ;;  %5887 = vst [vmem:[#allocation13_spill] sm:$0xff] %v4592_v50  ;;  %v5758_v53 = vand.u32 4294901760, %v4550_v37  ;;  %v5760_v54 = vand.u32 4294901760, %v4537_v34  ;;  %v4642_v3 = vld [vmem:[%s5754_s0 + $0x30] sm:$0xff] }
   0xb   :  { %3816 = vmatpush3.bf16.msra.mxu0 %v4452_v13  ;;  %4008 = vmatpush3.bf16.msra.mxu1 %v4452_v13  ;;  %5886 = vst [vmem:[#allocation12_spill] sm:$0xff] %v4578_v45  ;;  %5888 = vst [vmem:[#allocation14_spill] sm:$0xff] %v4597_v51  ;;  %v4609_v55 = vsub.f32 %v4511_v26, %v4553_v38  ;;  %v4613_v56 = vsub.f32 %v4516_v27, %v4556_v39  ;;  %v5770_v57 = vand.u32 4294901760, %v4565_v42 }
   0xc   :  { %3818 = vmatprep.subr.bf16.mxu0 %v4486_v19  ;;  %4010 = vmatprep.subr.bf16.mxu1 %v4486_v19  ;;  %v134_v44 = vand.u32 4294901760, %v133_v36  ;;  %v5761_v58 = vand.u32 4294901760, %v4558_v40  ;;  %v5765_v59 = vand.u32 4294901760, %v4570_v43  ;;  %v5768_v60 = vand.u32 4294901760, %v4584_v47  ;;  %5892 = vst [vmem:[#allocation18_spill] sm:$0xff] %v4642_v3 }
   0xd   :  { %5889 = vst [vmem:[#allocation15_spill] sm:$0xff] %v4609_v55  ;;  %5890 = vst [vmem:[#allocation16_spill] sm:$0xff] %v4613_v56  ;;  %v4621_v61 = vand.u32 4294901760, %v4592_v50  ;;  %v4624_v62 = vand.u32 4294901760, %v4597_v51  ;;  %v4632_v63 = vpack.c.bf16 %v5763_v46, %v5764_v41  ;;  %v5766_v0 = vand.u32 4294901760, %v4603_v52 }
   0xe   :  { %3169 = vmatprep.mubr.f32.mxu0 %v134_v44  ;;  %v294_v1 = vsub.f32 %v4535_v33, %v5762_v48  ;;  %v5767_v2 = vand.u32 4294901760, %v4587_v49  ;;  %v4648_v4 = vsub.f32 %v4550_v37, %v5758_v53  ;;  %v301_v5 = vsub.f32 %v4537_v34, %v5760_v54 }
   0xf   :  { %3820 = vmatpush3.bf16.msra.mxu0 %v4486_v19  ;;  %4012 = vmatpush3.bf16.msra.mxu1 %v4486_v19  ;;  %5891 = vst [vmem:[#allocation17_spill] sm:$0xff] %v4632_v63  ;;  %v5769_v6 = vand.u32 4294901760, %v4609_v55  ;;  %v5771_v9 = vand.u32 4294901760, %v4613_v56  ;;  %v308_v36 = vsub.f32 %v4558_v40, %v5761_v58  ;;  %v4661_v44 = vsub.f32 %v4441_v7, %v62_v11  ;;  %v4683_v7 = vld [vmem:[%s5754_s0 + $0x38] sm:$0xff] }
  0x10   :  { %3822 = vmatprep.subr.bf16.mxu0 %v4527_v30  ;;  %4014 = vmatprep.subr.bf16.mxu1 %v4527_v30  ;;  %v4666_v53 = vsub.f32 %v4446_v8, %v65_v12  ;;  %v4671_v29 = vsub.f32 %v4592_v50, %v4621_v61  ;;  %v4675_v54 = vsub.f32 %v4597_v51, %v4624_v62  ;;  %v4678_v58 = vand.u32 4294901760, %v4642_v3 }
  0x11   :  { %5895 = vst [vmem:[#allocation21_spill] sm:$0xff] %v4683_v7  ;;  %v4691_v8 = vpack.c.bf16 %v5765_v59, %v5770_v57  ;;  %v4697_v11 = vpack.c.bf16 %v5766_v0, %v5768_v60  ;;  %v295_v12 = vand.u32 4294901760, %v294_v1  ;;  %v315_v48 = vsub.f32 %v4587_v49, %v5767_v2  ;;  %v4717_v1 = vld [vmem:[%s5754_s0 + $0x40] sm:$0xff]  ;;  %v4722_v2 = vld [vmem:[%s5754_s0 + $0x48] sm:$0xff] }
  0x12   :  { %5893 = vst [vmem:[#allocation19_spill] sm:$0xff] %v4671_v29  ;;  %5894 = vst [vmem:[#allocation20_spill] sm:$0xff] %v4675_v54  ;;  %v302_v41 = vand.u32 4294901760, %v301_v5  ;;  %v4707_v59 = vsub.f32 %v4609_v55, %v5769_v6  ;;  %v4712_v0 = vsub.f32 %v4613_v56, %v5771_v9  ;;  %v309_v5 = vand.u32 4294901760, %v308_v36 }
  0x13   :  { %3824 = vmatpush3.bf16.msra.mxu0 %v4527_v30  ;;  %4016 = vmatpush3.bf16.msra.mxu1 %v4527_v30  ;;  %5896 = vst [vmem:[#allocation22_spill] sm:$0xff] %v4691_v8  ;;  %5897 = vst [vmem:[#allocation23_spill] sm:$0xff] %v4697_v11  ;;  %v4727_v57 = vand.u32 4294901760, %v4683_v7  ;;  %v4734_v31 = vsub.f32 %v4642_v3, %v4678_v58  ;;  %v4739_v36 = vsub.f32 %v4457_v14, %v68_v20 }
  0x14   :  { %3826 = vmatprep.subr.bf16.mxu0 %v4578_v45  ;;  %4018 = vmatprep.subr.bf16.mxu1 %v4578_v45  ;;  %5898 = vst [vmem:[#allocation24_spill] sm:$0xff] %v4717_v1  ;;  %5899 = vst [vmem:[#allocation25_spill] sm:$0xff] %v4722_v2  ;;  %v316_v6 = vand.u32 4294901760, %v315_v48  ;;  %v4746_v9 = vsub.f32 %v4462_v15, %v71_v21  ;;  %v4749_v46 = vand.u32 4294901760, %v4717_v1  ;;  %v4752_v60 = vand.u32 4294901760, %v4722_v2 }
  0x15   :  { %5900 = vst [vmem:[#allocation26_spill] sm:$0xff] %v4734_v31  ;;  %v4755_v14 = vpack.c.bf16 %v302_v41, %v295_v12  ;;  %v154_v20 = vand.u32 4294901760, %v4707_v59  ;;  %v4761_v48 = vsub.f32 %v4493_v22, %v74_v28  ;;  %v5902_v15 = vand.u32 4294901760, %v4499_v23  ;;  %v4782_v22 = vld [vmem:[%s5754_s0 + $0x50] sm:$0xff] }
  0x16   :  { %v5903_v50 = vand.u32 4294901760, %v4661_v44  ;;  %v5904_v41 = vand.u32 4294901760, %v4666_v53  ;;  %v4777_v12 = vsub.f32 %v4683_v7, %v4727_v57  ;;  %5906 = vst [vmem:[#allocation29_spill] sm:$0xff] %v4782_v22  ;;  %v4799_v7 = vpack.c.bf16 %v316_v6, %v309_v5  ;;  %v4819_v6 = vld [vmem:[%s5754_s0 + $0x58] sm:$0xff] }
  0x17   :  { %3828 = vmatpush3.bf16.msra.mxu0 %v4578_v45  ;;  %4020 = vmatpush3.bf16.msra.mxu1 %v4578_v45  ;;  %5901 = vst [vmem:[#allocation27_spill] sm:$0xff] %v4755_v14  ;;  %v4766_v21 = vsub.f32 %v4499_v23, %v5902_v15  ;;  %v5907_v23 = vand.u32 4294901760, %v4671_v29  ;;  %v4814_v27 = vand.u32 4294901760, %v4782_v22  ;;  %5912 = vst [vmem:[#allocation33_spill] sm:$0xff] %v4819_v6  ;;  %v5913_v5 = vand.u32 4294901760, %v4533_v32 }
  0x18   :  { %3830 = vmatprep.subr.bf16.mxu0 %v4632_v63  ;;  %4022 = vmatprep.subr.bf16.mxu1 %v4632_v63  ;;  %v322_v51 = vsub.f32 %v4661_v44, %v5903_v50  ;;  %v329_v59 = vsub.f32 %v4666_v53, %v5904_v41  ;;  %5905 = vst [vmem:[#allocation28_spill] sm:$0xff] %v4777_v12  ;;  %v5908_v50 = vand.u32 4294901760, %v4675_v54  ;;  %5909 = vst [vmem:[#allocation30_spill] sm:$0xff] %v4799_v7 }
  0x19   :  { %v4788_v28 = vsub.f32 %v4671_v29, %v5907_v23  ;;  %v4804_v23 = vsub.f32 %v4717_v1, %v4749_v46  ;;  %v4824_v26 = vsub.f32 %v4533_v32, %v5913_v5  ;;  %v5914_v3 = vand.u32 4294901760, %v4543_v35 }
  0x1a   :  { %v4793_v15 = vsub.f32 %v4675_v54, %v5908_v50  ;;  %v4808_v50 = vsub.f32 %v4722_v2, %v4752_v60  ;;  %v323_v1 = vand.u32 4294901760, %v322_v51  ;;  %v330_v2 = vand.u32 4294901760, %v329_v59 }
  0x1b   :  { %3832 = vmatpush3.bf16.msra.mxu0 %v4632_v63  ;;  %4024 = vmatpush3.bf16.msra.mxu1 %v4632_v63  ;;  %5910 = vst [vmem:[#allocation31_spill] sm:$0xff] %v4804_v23  ;;  %v4830_v41 = vsub.f32 %v4543_v35, %v5914_v3  ;;  %v174_v17 = vand.u32 4294901760, %v4788_v28  ;;  %v5915_v63 = vand.u32 4294901760, %v4734_v31  ;;  %v5916_v51 = vand.u32 4294901760, %v4739_v36  ;;  %v4846_v35 = vld [vmem:[%s5754_s0 + $0x60] sm:$0xff] }
  0x1c   :  { %3834 = vmatprep.subr.bf16.mxu0 %v4691_v8  ;;  %4026 = vmatprep.subr.bf16.mxu1 %v4691_v8  ;;  %5911 = vst [vmem:[#allocation32_spill] sm:$0xff] %v4808_v50  ;;  %5917 = vst [vmem:[#allocation34_spill] sm:$0xff] %v4846_v35  ;;  %v5918_v3 = vand.u32 4294901760, %v4746_v9  ;;  %v4856_v5 = vand.u32 4294901760, %v4819_v6  ;;  %v4872_v30 = vpack.c.bf16 %v330_v2, %v323_v1  ;;  %v4879_v19 = vand.u32 4294901760, %v4846_v35  ;;  %v4886_v2 = vld [vmem:[%s5754_s0 + $0x68] sm:$0xff] }
  0x1d   :  { %v4838_v32 = vsub.f32 %v4734_v31, %v5915_v63  ;;  %v336_v59 = vsub.f32 %v4739_v36, %v5916_v51  ;;  %v5919_v51 = vand.u32 4294901760, %v4761_v48  ;;  %v5924_v31 = vand.u32 4294901760, %v4777_v12  ;;  %5925 = vst [vmem:[#allocation37_spill] sm:$0xff] %v4886_v2 }
  0x1e   :  { %v343_v28 = vsub.f32 %v4746_v9, %v5918_v3  ;;  %v4867_v3 = vsub.f32 %v4782_v22, %v4814_v27  ;;  %5923 = vst [vmem:[#allocation36_spill] sm:$0xff] %v4872_v30  ;;  %v5927_v1 = vand.u32 4294901760, %v4570_v43  ;;  %v5929_v22 = vand.u32 4294901760, %v4808_v50 }
  0x1f   :  { %3836 = vmatpush3.bf16.msra.mxu0 %v4691_v8  ;;  %4028 = vmatpush3.bf16.msra.mxu1 %v4691_v8  ;;  %v184_v8 = vand.u32 4294901760, %v4793_v15  ;;  %v350_v16 = vsub.f32 %v4761_v48, %v5919_v51  ;;  %v5922_v15 = vand.u32 4294901760, %v4648_v4  ;;  %v203_v54 = vsub.f32 %v4777_v12, %v5924_v31 }
  0x20   :  { %3838 = vmatprep.subr.bf16.mxu0 %v4697_v11  ;;  %4030 = vmatprep.subr.bf16.mxu1 %v4697_v11  ;;  %5921 = vst [vmem:[#allocation35_spill] sm:$0xff] %v4867_v3  ;;  %v370_v51 = vand.u32 4294901760, %v4830_v41  ;;  %v337_v63 = vand.u32 4294901760, %v336_v59  ;;  %v5926_v4 = vand.u32 4294901760, %v4565_v42  ;;  %v4925_v12 = vsub.f32 %v4846_v35, %v4879_v19 }
  0x21   :  { %v4928_v29 = vand.u32 4294901760, %v4886_v2  ;;  %v5936_v37 = vand.u32 4294901760, %v4867_v3  ;;  %v5947_v24 = vand.u32 4294901760, %v4739_v36 }
  0x22   :  { %v4891_v31 = vsub.f32 %v4565_v42, %v5926_v4  ;;  %v4909_v42 = vsub.f32 %v4819_v6, %v4856_v5  ;;  %v351_v4 = vand.u32 4294901760, %v350_v16  ;;  %v371_v6 = vsub.f32 %v4830_v41, %v370_v51 }
  0x23   :  { %3840 = vmatpush3.bf16.msra.mxu0 %v4697_v11  ;;  %4032 = vmatpush3.bf16.msra.mxu1 %v4697_v11  ;;  %v5920_v11 = vand.u32 4294901760, %v4766_v21 }
  0x24   :  { %3842 = vmatprep.subr.bf16.mxu0 %v4755_v14  ;;  %4034 = vmatprep.subr.bf16.mxu1 %v4755_v14  ;;  %v377_v16 = vand.u32 4294901760, %v4891_v31 }
  0x25   :  { %v357_v45 = vsub.f32 %v4766_v21, %v5920_v11  ;;  %v194_v11 = vand.u32 4294901760, %v4838_v32  ;;  %v5928_v32 = vand.u32 4294901760, %v4804_v23 }
  0x26   :  { %3170 = vmatmul.mubr.f32.vlgmr.msra.gmra.mrb[0].mxu0 %v5922_v15  ;;  %v4896_v15 = vsub.f32 %v4570_v43, %v5927_v1  ;;  %v4914_v43 = vld [vmem:[%s5754_s0 + $0x70] sm:$0xff] }
  0x27   :  { %3844 = vmatpush3.bf16.msra.mxu0 %v4755_v14  ;;  %3172 = vmatprep.mubr.f32.mxu0 %v154_v20  ;;  %v344_v20 = vand.u32 4294901760, %v343_v28  ;;  %v213_v59 = vsub.f32 %v4804_v23, %v5928_v32  ;;  %v4905_v14 = vsub.f32 %v4808_v50, %v5929_v22  ;;  %5930 = vst [vmem:[#allocation38_spill] sm:$0xff] %v4914_v43  ;;  %v358_v28 = vand.u32 4294901760, %v357_v45 }
  0x28   :  { %3846 = vmatprep.subr.bf16.mxu0 %v4799_v7  ;;  %v5931_v32 = vand.u32 4294901760, %v4824_v26  ;;  %v5932_v22 = vand.u32 4294901760, %v4712_v0  ;;  %v204_v50 = vand.u32 4294901760, %v203_v54  ;;  %v384_v45 = vand.u32 4294901760, %v4896_v15  ;;  %v4939_v54 = vld [vmem:[%s5754_s0 + $0x78] sm:$0xff] }
  0x29   :  { %v4934_v0 = vand.u32 4294901760, %v4914_v43  ;;  %5933 = vst [vmem:[#allocation39_spill] sm:$0xff] %v4939_v54  ;;  %v214_v1 = vand.u32 4294901760, %v213_v59  ;;  %v224_v13 = vand.u32 4294901760, %v4905_v14  ;;  %v4956_v55 = vpack.c.bf16 %v358_v28, %v351_v4 }
  0x2a   :  { %v364_v23 = vsub.f32 %v4824_v26, %v5931_v32  ;;  %3173 = vmatmul.mubr.f32.gmra.mrb[2].mxu0 %v5932_v22  ;;  %v5934_v32 = vand.u32 4294901760, %v4584_v47  ;;  %v4964_v59 = vsub.f32 %v4886_v2, %v4928_v29  ;;  %v385_v14 = vsub.f32 %v4896_v15, %v384_v45 }
  0x2b   :  { %3848 = vmatpush3.bf16.msra.mxu0 %v4799_v7  ;;  %3175 = vmatprep.mubr.f32.mxu0 %v174_v17  ;;  %v4947_v17 = vpack.c.bf16 %v344_v20, %v337_v63  ;;  %v5935_v7 = vand.u32 4294901760, %v4603_v52  ;;  %v372_v63 = vand.u32 4294901760, %v371_v6  ;;  %v5937_v6 = vand.u32 4294901760, %v4535_v33 }
  0x2c   :  { %v4944_v22 = vsub.f32 %v4584_v47, %v5934_v32  ;;  %3850 = vmatprep.subr.bf16.mxu0 %v4872_v30  ;;  %v233_v47 = vsub.f32 %v4867_v3, %v5936_v37  ;;  %v365_v32 = vand.u32 4294901760, %v364_v23  ;;  %v4974_v37 = vsub.f32 %v4914_v43, %v4934_v0 }
  0x2d   :  { %v4953_v56 = vsub.f32 %v4603_v52, %v5935_v7  ;;  %v4967_v52 = vand.u32 4294901760, %v4939_v54  ;;  %v378_v7 = vsub.f32 %v4891_v31, %v377_v16  ;;  %v5938_v4 = vand.u32 4294901760, %v4537_v34 }
  0x2e   :  { %3176 = vmatmul.mubr.f32.gmra.mrb[4].mxu0 %v184_v8  ;;  %v391_v8 = vand.u32 4294901760, %v4944_v22  ;;  %v5941_v20 = vand.u32 4294901760, %v4587_v49  ;;  %v5943_v43 = vand.u32 4294901760, %v4661_v44  ;;  %v5944_v2 = vand.u32 4294901760, %v4666_v53 }
  0x2f   :  { %3852 = vmatpush3.bf16.msra.mxu0 %v4872_v30  ;;  %3178 = vmatprep.mubr.f32.mxu0 %v194_v11  ;;  %v398_v23 = vand.u32 4294901760, %v4953_v56  ;;  %v4983_v28 = vpack.c.bf16 %v5938_v4, %v5937_v6  ;;  %v5940_v11 = vand.u32 4294901760, %v4558_v40  ;;  %v5946_v3 = vand.u32 4294901760, %v4909_v42 }
  0x30   :  { %3854 = vmatprep.subr.bf16.mxu0 %v4947_v17  ;;  %v4995_v30 = vpack.c.bf16 %v5944_v2, %v5943_v43  ;;  %v5948_v6 = vand.u32 4294901760, %v4746_v9  ;;  %v386_v43 = vand.u32 4294901760, %v385_v14 }
  0x31   :  { %5939 = vst [vmem:[#allocation40_spill] sm:$0xff] %v4983_v28  ;;  %v4989_v35 = vpack.c.bf16 %v5941_v20, %v5940_v11  ;;  %v243_v10 = vsub.f32 %v4909_v42, %v5946_v3  ;;  %v5950_v28 = vand.u32 4294901760, %v4761_v48  ;;  %v5951_v20 = vand.u32 4294901760, %v4766_v21 }
  0x32   :  { %5945 = vst [vmem:[#allocation42_spill] sm:$0xff] %v4995_v30  ;;  %v5004_v4 = vpack.c.bf16 %v5948_v6, %v5947_v24  ;;  %3179 = vmatmul.mubr.f32.gmra.mrb[6].mxu0 %v204_v50  ;;  %v5019_v3 = vsub.f32 %v4939_v54, %v4967_v52  ;;  %v5021_v30 = vpack.c.bf16 %v384_v45, %v377_v16 }
  0x33   :  { %5942 = vst [vmem:[#allocation41_spill] sm:$0xff] %v4989_v35  ;;  %v5010_v11 = vpack.c.bf16 %v5951_v20, %v5950_v28  ;;  %v5953_v35 = vand.u32 4294901760, %v4824_v26  ;;  %v5023_v24 = vpack.c.bf16 %v398_v23, %v391_v8  ;;  %3856 = vmatpush3.bf16.msra.mxu0 %v4947_v17  ;;  %3181 = vmatprep.mubr.f32.mxu0 %v214_v1  ;;  %v234_v28 = vand.u32 4294901760, %v233_v47 }
  0x34   :  { %5949 = vst [vmem:[#allocation43_spill] sm:$0xff] %v5004_v4  ;;  %5955 = vst [vmem:[#allocation46_spill] sm:$0xff] %v5021_v30  ;;  %v5026_v6 = vpack.c.bf16 %v372_v63, %v365_v32  ;;  %3858 = vmatprep.subr.bf16.mxu0 %v4956_v55  ;;  %v379_v20 = vand.u32 4294901760, %v378_v7  ;;  %v392_v16 = vsub.f32 %v4944_v22, %v391_v8  ;;  %v244_v54 = vand.u32 4294901760, %v243_v10 }
  0x35   :  { %5952 = vst [vmem:[#allocation44_spill] sm:$0xff] %v5010_v11  ;;  %v5014_v2 = vpack.c.bf16 %v370_v51, %v5953_v35  ;;  %5956 = vst [vmem:[#allocation47_spill] sm:$0xff] %v5023_v24  ;;  %v5957_v35 = vand.u32 4294901760, %v4925_v12  ;;  %v5836_v51 = vand.u32 4294901760, %v4974_v37  ;;  %v399_v45 = vsub.f32 %v4953_v56, %v398_v23 }
  0x36   :  { %3182 = vmatmul.mubr.f32.gmra.mrb[8].mxu0 %v224_v13  ;;  %v5958_v1 = vand.u32 4294901760, %v4964_v59  ;;  %v5835_v32 = vand.u32 4294901760, %v5019_v3  ;;  %v5044_v14 = vpack.c.bf16 %v386_v43, %v379_v20  ;;  %v393_v13 = vand.u32 4294901760, %v392_v16  ;;  %v5969_v20 = vld [vmem:[#allocation10_spill] sm:$0xff]  ;;  %v5970_v16 = vld [vmem:[#allocation28_spill] sm:$0xff] }
  0x37   :  { %5954 = vst [vmem:[#allocation45_spill] sm:$0xff] %v5014_v2  ;;  %v253_v50 = vsub.f32 %v4925_v12, %v5957_v35  ;;  %3860 = vmatpush3.bf16.msra.mxu0 %v4956_v55  ;;  %3184 = vmatprep.mubr.f32.mxu0 %v234_v28  ;;  %v273_v7 = vsub.f32 %v4974_v37, %v5836_v51  ;;  %v400_v10 = vand.u32 4294901760, %v399_v45  ;;  %v5971_v45 = vld [vmem:[#allocation31_spill] sm:$0xff] }
  0x38   :  { %v263_v47 = vsub.f32 %v4964_v59, %v5958_v1  ;;  %3862 = vmatprep.subr.bf16.mxu0 %v5026_v6  ;;  %v283_v23 = vsub.f32 %v5019_v3, %v5835_v32  ;;  %v5064_v43 = vpack.c.bf16 %v4587_v49, %v4558_v40  ;;  %v5088_v40 = vpack.c.bf16 %v4766_v21, %v4761_v48  ;;  %v5963_v48 = vld [vmem:[#allocation3_spill] sm:$0xff]  ;;  %v5964_v21 = vld [vmem:[#allocation16_spill] sm:$0xff] }
  0x39   :  { %v254_v63 = vand.u32 4294901760, %v253_v50  ;;  %v274_v28 = vand.u32 4294901760, %v273_v7  ;;  %v5051_v35 = vpack.c.bf16 %v400_v10, %v393_v13  ;;  %v5096_v49 = vpack.c.bf16 %v4830_v41, %v4824_v26  ;;  %v5965_v41 = vld [vmem:[#allocation19_spill] sm:$0xff]  ;;  %v5972_v1 = vld [vmem:[#allocation12_spill] sm:$0xff]  ;;  %v5975_v7 = vld [vmem:[#allocation17_spill] sm:$0xff] }
  0x3a   :  { %3185 = vmatmul.mubr.f32.gmra.mrb[10].mxu0 %v244_v54  ;;  %v264_v8 = vand.u32 4294901760, %v263_v47  ;;  %v284_v50 = vand.u32 4294901760, %v283_v23  ;;  %v5057_v54 = vpack.c.bf16 %v4537_v34, %v4535_v33  ;;  %v5072_v33 = vpack.c.bf16 %v4666_v53, %v4661_v44  ;;  %v5960_v44 = vld [vmem:[#allocation2_spill] sm:$0xff]  ;;  %v5973_v47 = vld [vmem:[#allocation32_spill] sm:$0xff]  ;;  %v5977_v10 = vld [vmem:[#allocation23_spill] sm:$0xff] }
  0x3b   :  { %3864 = vmatpush3.bf16.msra.mxu0 %v5026_v6  ;;  %3187 = vmatprep.mubr.f32.mxu0 %v254_v63  ;;  %v5080_v34 = vpack.c.bf16 %v4746_v9, %v4739_v36  ;;  %v5104_v53 = vpack.c.bf16 %v4896_v15, %v4891_v31  ;;  %v5112_v26 = vpack.c.bf16 %v4953_v56, %v4944_v22  ;;  %v5959_v9 = vld [vmem:[#allocation7_spill] sm:$0xff]  ;;  %v5966_v31 = vld [vmem:[#allocation6_spill] sm:$0xff]  ;;  %v5967_v15 = vld [vmem:[#allocation20_spill] sm:$0xff]  ;;  %v5983_v51 = vand.u32 4294901760, %v5964_v21 }
  0x3c   :  { %3866 = vmatprep.subr.bf16.mxu0 %v5044_v14  ;;  %v5961_v36 = vld [vmem:[#allocation11_spill] sm:$0xff]  ;;  %v5968_v22 = vld [vmem:[#allocation26_spill] sm:$0xff]  ;;  %v5979_v23 = vld [vmem:[#allocation40_spill] sm:$0xff] }
  0x3d   :  { %v5962_v56 = vld [vmem:[#allocation15_spill] sm:$0xff]  ;;  %v5976_v13 = vld [vmem:[#allocation22_spill] sm:$0xff]  ;;  %v5982_v32 = vld [vmem:[#allocation41_spill] sm:$0xff] }
  0x3e   :  { %3188 = vmatmul.mubr.f32.gmra.mrb[12].mxu0 %v264_v8  ;;  %v5974_v63 = vld [vmem:[#allocation35_spill] sm:$0xff]  ;;  %v5978_v8 = vand.u32 4294901760, %v5959_v9 }
  0x3f   :  { %3868 = vmatpush3.bf16.msra.mxu0 %v5044_v14  ;;  %3190 = vmatprep.mubr.f32.mxu0 %v274_v28  ;;  %v5980_v28 = vand.u32 4294901760, %v5961_v36 }
  0x40   :  { %3870 = vmatprep.subr.bf16.mxu0 %v5051_v35 }
  0x42   :  { %3191 = vmatmul.mubr.f32.gmra.mrb[14].mxu0 %v284_v50  ;;  %v5981_v50 = vand.u32 4294901760, %v5962_v56 }
  0x43   :  { %3872 = vmatpush3.bf16.msra.mxu0 %v5051_v35  ;;  %3225 = vmatprep.mubr.f32.mxu0 %v4478_v18 }
  0x44   :  { %3874 = vmatprep.subr.bf16.mxu0 %v5057_v54 }
  0x46   :  { %3226 = vmatmul.mubr.f32.vlgmr.msra.gmra.mrb[0].mxu0 %v4506_v25 }
  0x47   :  { %3876 = vmatpush3.bf16.msra.mxu0 %v5057_v54  ;;  %3228 = vmatprep.mubr.f32.mxu0 %v4553_v38 }
  0x48   :  { %3878 = vmatprep.subr.bf16.mxu0 %v5064_v43 }
  0x4a   :  { %3229 = vmatmul.mubr.f32.gmra.mrb[2].mxu0 %v4556_v39 }
  0x4b   :  { %3880 = vmatpush3.bf16.msra.mxu0 %v5064_v43  ;;  %3231 = vmatprep.mubr.f32.mxu0 %v4621_v61 }
  0x4c   :  { %3882 = vmatprep.subr.bf16.mxu0 %v5072_v33 }
  0x4e   :  { %3232 = vmatmul.mubr.f32.gmra.mrb[4].mxu0 %v4624_v62 }
  0x4f   :  { %3884 = vmatpush3.bf16.msra.mxu0 %v5072_v33  ;;  %3234 = vmatprep.mubr.f32.mxu0 %v4678_v58 }
  0x50   :  { %3886 = vmatprep.subr.bf16.mxu0 %v5080_v34 }
  0x52   :  { %3235 = vmatmul.mubr.f32.gmra.mrb[6].mxu0 %v4727_v57 }
  0x53   :  { %3888 = vmatpush3.bf16.msra.mxu0 %v5080_v34  ;;  %3237 = vmatprep.mubr.f32.mxu0 %v4749_v46 }
  0x54   :  { %3890 = vmatprep.subr.bf16.mxu0 %v5088_v40 }
  0x56   :  { %3238 = vmatmul.mubr.f32.gmra.mrb[8].mxu0 %v4752_v60 }
  0x57   :  { %3892 = vmatpush3.bf16.msra.mxu0 %v5088_v40  ;;  %3240 = vmatprep.mubr.f32.mxu0 %v4814_v27 }
  0x58   :  { %3894 = vmatprep.subr.bf16.mxu0 %v5096_v49 }
  0x5a   :  { %3241 = vmatmul.mubr.f32.gmra.mrb[10].mxu0 %v4856_v5 }
  0x5b   :  { %3896 = vmatpush3.bf16.msra.mxu0 %v5096_v49  ;;  %3243 = vmatprep.mubr.f32.mxu0 %v4879_v19 }
  0x5c   :  { %3898 = vmatprep.subr.bf16.mxu0 %v5104_v53 }
  0x5e   :  { %3244 = vmatmul.mubr.f32.gmra.mrb[12].mxu0 %v4928_v29 }
  0x5f   :  { %3900 = vmatpush3.bf16.msra.mxu0 %v5104_v53  ;;  %3246 = vmatprep.mubr.f32.mxu0 %v4934_v0 }
  0x60   :  { %3902 = vmatprep.subr.bf16.mxu0 %v5112_v26 }
  0x62   :  { %3247 = vmatmul.mubr.f32.gmra.mrb[14].mxu0 %v4967_v52 }
  0x63   :  { %3904 = vmatpush3.bf16.msra.mxu0 %v5112_v26  ;;  %3281 = vmatprep.mubr.f32.mxu0 %v5959_v9  ;;  %v5984_v9 = vand.u32 4294901760, %v5965_v41 }
  0x64   :  { %3906 = vmatprep.subr.bf16.mxu0 %v5960_v44 }
  0x66   :  { %3282 = vmatmul.mubr.f32.vlgmr.msra.gmra.mrb[0].mxu0 %v5961_v36  ;;  %v5986_v36 = vand.u32 4294901760, %v5967_v15 }
  0x67   :  { %3908 = vmatpush3.bf16.msra.mxu0 %v5960_v44  ;;  %3284 = vmatprep.mubr.f32.mxu0 %v5962_v56  ;;  %v5987_v56 = vand.u32 4294901760, %v5968_v22 }
  0x68   :  { %3910 = vmatprep.subr.bf16.mxu0 %v5963_v48 }
  0x6a   :  { %3285 = vmatmul.mubr.f32.gmra.mrb[2].mxu0 %v5964_v21  ;;  %v5988_v21 = vand.u32 4294901760, %v5970_v16 }
  0x6b   :  { %3912 = vmatpush3.bf16.msra.mxu0 %v5963_v48  ;;  %3287 = vmatprep.mubr.f32.mxu0 %v5965_v41  ;;  %v5990_v41 = vand.u32 4294901760, %v5973_v47 }
  0x6c   :  { %3914 = vmatprep.subr.bf16.mxu0 %v5966_v31 }
  0x6e   :  { %3288 = vmatmul.mubr.f32.gmra.mrb[4].mxu0 %v5967_v15  ;;  %v5991_v15 = vand.u32 4294901760, %v5974_v63 }
  0x6f   :  { %3916 = vmatpush3.bf16.msra.mxu0 %v5966_v31  ;;  %3290 = vmatprep.mubr.f32.mxu0 %v5968_v22  ;;  %v5992_v22 = vand.u32 4294901760, %v4909_v42 }
  0x70   :  { %3918 = vmatprep.subr.bf16.mxu0 %v5969_v20 }
  0x72   :  { %3291 = vmatmul.mubr.f32.gmra.mrb[6].mxu0 %v5970_v16  ;;  %v5993_v16 = vand.u32 4294901760, %v4925_v12 }
  0x73   :  { %3920 = vmatpush3.bf16.msra.mxu0 %v5969_v20  ;;  %3293 = vmatprep.mubr.f32.mxu0 %v5971_v45 }
  0x74   :  { %3922 = vmatprep.subr.bf16.mxu0 %v5972_v1 }
  0x76   :  { %3294 = vmatmul.mubr.f32.gmra.mrb[8].mxu0 %v5973_v47  ;;  %v5995_v47 = vand.u32 4294901760, %v4974_v37 }
  0x77   :  { %3924 = vmatpush3.bf16.msra.mxu0 %v5972_v1  ;;  %3296 = vmatprep.mubr.f32.mxu0 %v5974_v63 }
  0x78   :  { %3926 = vmatprep.subr.bf16.mxu0 %v5975_v7 }
  0x7a   :  { %3297 = vmatmul.mubr.f32.gmra.mrb[10].mxu0 %v4909_v42  ;;  %v5996_v42 = vand.u32 4294901760, %v5019_v3 }
  0x7b   :  { %3928 = vmatpush3.bf16.msra.mxu0 %v5975_v7  ;;  %3299 = vmatprep.mubr.f32.mxu0 %v4925_v12 }
  0x7c   :  { %3930 = vmatprep.subr.bf16.mxu0 %v5976_v13 }
  0x7e   :  { %3300 = vmatmul.mubr.f32.gmra.mrb[12].mxu0 %v4964_v59 }
  0x7f   :  { %3932 = vmatpush3.bf16.msra.mxu0 %v5976_v13  ;;  %3302 = vmatprep.mubr.f32.mxu0 %v4974_v37 }
  0x80   :  { %3934 = vmatprep.subr.bf16.mxu0 %v5977_v10 }
  0x82   :  { %3303 = vmatmul.mubr.f32.gmra.mrb[14].mxu0 %v5019_v3 }
  0x83   :  { %3936 = vmatpush3.bf16.msra.mxu0 %v5977_v10  ;;  %3337 = vmatprep.mubr.f32.mxu0 %v5978_v8  ;;  %v5985_v8 = vld [vmem:[#allocation42_spill] sm:$0xff] }
  0x84   :  { %3938 = vmatprep.subr.bf16.mxu0 %v5979_v23 }
  0x86   :  { %3338 = vmatmul.mubr.f32.vlgmr.msra.gmra.mrb[0].mxu0 %v5980_v28 }
  0x87   :  { %3940 = vmatpush3.bf16.msra.mxu0 %v5979_v23  ;;  %3340 = vmatprep.mubr.f32.mxu0 %v5981_v50  ;;  %v6005_v50 = vld [vmem:[#allocation14_spill] sm:$0xff] }
  0x88   :  { %3942 = vmatprep.subr.bf16.mxu0 %v5982_v32 }
  0x8a   :  { %3341 = vmatmul.mubr.f32.gmra.mrb[2].mxu0 %v5983_v51  ;;  %v5989_v51 = vand.u32 4294901760, %v5971_v45  ;;  %v5994_v45 = vand.u32 4294901760, %v4964_v59 }
  0x8b   :  { %3944 = vmatpush3.bf16.msra.mxu0 %v5982_v32  ;;  %3343 = vmatprep.mubr.f32.mxu0 %v5984_v9 }
  0x8c   :  { %3946 = vmatprep.subr.bf16.mxu0 %v5985_v8 }
  0x8e   :  { %3344 = vmatmul.mubr.f32.gmra.mrb[4].mxu0 %v5986_v36 }
  0x8f   :  { %3948 = vmatpush3.bf16.msra.mxu0 %v5985_v8  ;;  %3346 = vmatprep.mubr.f32.mxu0 %v5987_v56 }
  0x90   :  { %3950 = vmatprep.subr.bf16.mxu0 %v5004_v4 }
  0x92   :  { %3347 = vmatmul.mubr.f32.gmra.mrb[6].mxu0 %v5988_v21 }
  0x93   :  { %3952 = vmatpush3.bf16.msra.mxu0 %v5004_v4  ;;  %3349 = vmatprep.mubr.f32.mxu0 %v5989_v51  ;;  %v6007_v51 = vld [vmem:[#allocation13_spill] sm:$0xff]  ;;  %v6030_v4 = vld [vmem:[#allocation38_spill] sm:$0xff] }
  0x94   :  { %3954 = vmatprep.subr.bf16.mxu0 %v5010_v11 }
  0x96   :  { %3350 = vmatmul.mubr.f32.gmra.mrb[8].mxu0 %v5990_v41 }
  0x97   :  { %3956 = vmatpush3.bf16.msra.mxu0 %v5010_v11  ;;  %3352 = vmatprep.mubr.f32.mxu0 %v5991_v15 }
  0x98   :  { %3958 = vmatprep.subr.bf16.mxu0 %v5014_v2 }
  0x9a   :  { %3353 = vmatmul.mubr.f32.gmra.mrb[10].mxu0 %v5992_v22 }
  0x9b   :  { %3960 = vmatpush3.bf16.msra.mxu0 %v5014_v2  ;;  %3355 = vmatprep.mubr.f32.mxu0 %v5993_v16 }
  0x9c   :  { %3962 = vmatprep.subr.bf16.mxu0 %v5021_v30 }
  0x9e   :  { %3356 = vmatmul.mubr.f32.gmra.mrb[12].mxu0 %v5994_v45 }
  0x9f   :  { %3964 = vmatpush3.bf16.msra.mxu0 %v5021_v30  ;;  %3358 = vmatprep.mubr.f32.mxu0 %v5995_v47  ;;  %v6026_v30 = vld [vmem:[#allocation34_spill] sm:$0xff] }
  0xa0   :  { %3966 = vmatprep.subr.bf16.mxu0 %v5023_v24 }
  0xa2   :  { %3359 = vmatmul.mubr.f32.gmra.mrb[14].mxu0 %v5996_v42 }
  0xa3   :  { %3968 = vmatpush3.bf16.msra.mxu0 %v5023_v24  ;;  %3393 = vmatprep.mubr.f32.mxu0 %v4478_v18 }
  0xa4   :  { %3970 = vmatprep.subr.bf16.mxu0 %v5960_v44 }
  0xa6   :  { %3394 = vmatmul.mubr.f32.vlgmr.msra.gmra.mrb[0].mxu0 %v4506_v25 }
  0xa7   :  { %3972 = vmatpush3.bf16.msra.mxu0 %v5960_v44  ;;  %3396 = vmatprep.mubr.f32.mxu0 %v4553_v38 }
  0xa8   :  { %3974 = vmatprep.subr.bf16.mxu0 %v5963_v48 }
  0xaa   :  { %3397 = vmatmul.mubr.f32.gmra.mrb[2].mxu0 %v4556_v39 }
  0xab   :  { %3976 = vmatpush3.bf16.msra.mxu0 %v5963_v48  ;;  %3399 = vmatprep.mubr.f32.mxu0 %v4621_v61 }
  0xac   :  { %3978 = vmatprep.subr.bf16.mxu0 %v5966_v31 }
  0xae   :  { %3400 = vmatmul.mubr.f32.gmra.mrb[4].mxu0 %v4624_v62 }
  0xaf   :  { %3980 = vmatpush3.bf16.msra.mxu0 %v5966_v31  ;;  %3402 = vmatprep.mubr.f32.mxu0 %v4678_v58 }
  0xb0   :  { %3982 = vmatprep.subr.bf16.mxu0 %v5969_v20 }
  0xb2   :  { %3403 = vmatmul.mubr.f32.gmra.mrb[6].mxu0 %v4727_v57 }
  0xb3   :  { %3984 = vmatpush3.bf16.msra.mxu0 %v5969_v20  ;;  %3405 = vmatprep.mubr.f32.mxu0 %v4749_v46 }
  0xb4   :  { %3986 = vmatprep.subr.bf16.mxu0 %v5972_v1 }
  0xb6   :  { %3406 = vmatmul.mubr.f32.gmra.mrb[8].mxu0 %v4752_v60 }
  0xb7   :  { %3988 = vmatpush3.bf16.msra.mxu0 %v5972_v1  ;;  %3408 = vmatprep.mubr.f32.mxu0 %v4814_v27 }
  0xb8   :  { %3990 = vmatprep.subr.bf16.mxu0 %v5975_v7 }
  0xba   :  { %3409 = vmatmul.mubr.f32.gmra.mrb[10].mxu0 %v4856_v5 }
  0xbb   :  { %3992 = vmatpush3.bf16.msra.mxu0 %v5975_v7  ;;  %3411 = vmatprep.mubr.f32.mxu0 %v4879_v19 }
  0xbc   :  { %3994 = vmatprep.subr.bf16.mxu0 %v5976_v13 }
  0xbe   :  { %3412 = vmatmul.mubr.f32.gmra.mrb[12].mxu0 %v4928_v29 }
  0xbf   :  { %3996 = vmatpush3.bf16.msra.mxu0 %v5976_v13  ;;  %3414 = vmatprep.mubr.f32.mxu0 %v4934_v0 }
  0xc0   :  { %3998 = vmatprep.subr.bf16.mxu0 %v5977_v10 }
  0xc2   :  { %3415 = vmatmul.mubr.f32.gmra.mrb[14].mxu0 %v4967_v52 }
  0xc3   :  { %4000 = vmatpush3.bf16.msra.mxu0 %v5977_v10  ;;  %3449 = vmatprep.mubr.f32.mxu0 %v4478_v18 }
  0xc6   :  { %3450 = vmatmul.mubr.f32.vlgmr.msra.gmra.mrb[0].mxu0 %v4506_v25  ;;  %v5997_v25 = vld [vmem:[#allocation5_spill] sm:$0xff] }
  0xc7   :  { %3452 = vmatprep.mubr.f32.mxu0 %v4553_v38 }
  0xca   :  { %3453 = vmatmul.mubr.f32.gmra.mrb[2].mxu0 %v4556_v39 }
  0xcb   :  { %3455 = vmatprep.mubr.f32.mxu0 %v4621_v61 }
  0xce   :  { %3456 = vmatmul.mubr.f32.gmra.mrb[4].mxu0 %v4624_v62 }
  0xcf   :  { %3458 = vmatprep.mubr.f32.mxu0 %v4678_v58 }
  0xd2   :  { %3459 = vmatmul.mubr.f32.gmra.mrb[6].mxu0 %v4727_v57 }
  0xd3   :  { %3461 = vmatprep.mubr.f32.mxu0 %v4749_v46  ;;  %v5999_v46 = vld [vmem:[#allocation4_spill] sm:$0xff] }
  0xd6   :  { %3462 = vmatmul.mubr.f32.gmra.mrb[8].mxu0 %v4752_v60  ;;  %v6001_v60 = vld [vmem:[#allocation9_spill] sm:$0xff] }
  0xd7   :  { %3464 = vmatprep.mubr.f32.mxu0 %v4814_v27 }
  0xda   :  { %3465 = vmatmul.mubr.f32.gmra.mrb[10].mxu0 %v4856_v5  ;;  %v6003_v5 = vld [vmem:[#allocation8_spill] sm:$0xff] }
  0xdb   :  { %3467 = vmatprep.mubr.f32.mxu0 %v4879_v19 }
  0xde   :  { %3468 = vmatmul.mubr.f32.gmra.mrb[12].mxu0 %v4928_v29 }
  0xdf   :  { %3470 = vmatprep.mubr.f32.mxu0 %v4934_v0 }
  0xe2   :  { %3471 = vmatmul.mubr.f32.gmra.mrb[14].mxu0 %v4967_v52 }
 0x199   :  { %v3451_v18 = vpop.f32.mrb[0].mxu0 }
 0x19a   :  { %v5249_v38 = vsub.f32 %v5997_v25, %v3451_v18  ;;  %v1241_v39 = vpop.f32.mrb[1].mxu0 }
 0x19b   :  { %v5252_v57 = vsub.f32 %v5999_v46, %v1241_v39  ;;  %v6009_v46 = vld [vmem:[#allocation21_spill] sm:$0xff] }
 0x19c   :  { %5998 = vst [vmem:[#allocation7_spill] sm:$0xff] %v5249_v38  ;;  %v1352_v27 = vmul.f32 %v5249_v38, %v5249_v38 }
 0x19d   :  { %6000 = vst [vmem:[#allocation2_spill] sm:$0xff] %v5252_v57  ;;  %v1351_v19 = vmul.f32 %v5252_v57, %v5252_v57  ;;  %v3454_v58 = vpop.f32.mrb[2].mxu0 }
 0x19e   :  { %v5258_v29 = vand.u32 4294901760, %v1352_v27  ;;  %v5261_v61 = vsub.f32 %v6001_v60, %v3454_v58  ;;  %v1253_v62 = vpop.f32.mrb[3].mxu0 }
 0x19f   :  { %v5263_v12 = vand.u32 4294901760, %v1351_v19  ;;  %v5266_v0 = vsub.f32 %v6003_v5, %v1253_v62  ;;  %v6011_v62 = vld [vmem:[#allocation18_spill] sm:$0xff] }
 0x1a0   :  { %6002 = vst [vmem:[#allocation11_spill] sm:$0xff] %v5261_v61  ;;  %v5269_v59 = vsub.f32 %v1352_v27, %v5258_v29  ;;  %v1354_v52 = vmul.f32 %v5261_v61, %v5261_v61  ;;  %v6021_v61 = vld [vmem:[#allocation29_spill] sm:$0xff] }
 0x1a1   :  { %6004 = vst [vmem:[#allocation15_spill] sm:$0xff] %v5266_v0  ;;  %v5274_v37 = vsub.f32 %v1351_v19, %v5263_v12  ;;  %v1353_v3 = vmul.f32 %v5266_v0, %v5266_v0  ;;  %v3457_v63 = vpop.f32.mrb[4].mxu0 }
 0x1a2   :  { %v5278_v28 = vand.u32 4294901760, %v1354_v52  ;;  %v5281_v9 = vsub.f32 %v6005_v50, %v3457_v63  ;;  %v1265_v36 = vpop.f32.mrb[5].mxu0  ;;  %v5837_v56 = vand.u32 4294901760, %v5269_v59 }
 0x1a3   :  { %v5284_v21 = vand.u32 4294901760, %v1353_v3  ;;  %v5287_v41 = vsub.f32 %v6007_v51, %v1265_v36  ;;  %v5839_v15 = vand.u32 4294901760, %v5274_v37 }
 0x1a4   :  { %6006 = vst [vmem:[#allocation3_spill] sm:$0xff] %v5281_v9  ;;  %v5291_v22 = vsub.f32 %v1354_v52, %v5278_v28  ;;  %v1356_v16 = vmul.f32 %v5281_v9, %v5281_v9  ;;  %v1461_v45 = vsub.f32 %v5269_v59, %v5837_v56 }
 0x1a5   :  { %6008 = vst [vmem:[#allocation16_spill] sm:$0xff] %v5287_v41  ;;  %v5299_v47 = vsub.f32 %v1353_v3, %v5284_v21  ;;  %v1355_v42 = vmul.f32 %v5287_v41, %v5287_v41  ;;  %v3460_v18 = vpop.f32.mrb[6].mxu0  ;;  %v1451_v25 = vsub.f32 %v5274_v37, %v5839_v15  ;;  %v6015_v15 = vld [vmem:[#allocation24_spill] sm:$0xff] }
 0x1a6   :  { %v5306_v39 = vand.u32 4294901760, %v1356_v16  ;;  %v5309_v27 = vsub.f32 %v6009_v46, %v3460_v18  ;;  %v1277_v19 = vpop.f32.mrb[7].mxu0  ;;  %v5838_v58 = vand.u32 4294901760, %v5291_v22  ;;  %v1462_v36 = vand.u32 4294901760, %v1461_v45 }
 0x1a7   :  { %v5312_v60 = vand.u32 4294901760, %v1355_v42  ;;  %v5315_v5 = vsub.f32 %v6011_v62, %v1277_v19  ;;  %v1452_v52 = vand.u32 4294901760, %v1451_v25  ;;  %v5843_v3 = vand.u32 4294901760, %v5299_v47  ;;  %v6013_v62 = vld [vmem:[#allocation25_spill] sm:$0xff] }
 0x1a8   :  { %6010 = vst [vmem:[#allocation19_spill] sm:$0xff] %v5309_v27  ;;  %v5319_v63 = vsub.f32 %v1356_v16, %v5306_v39  ;;  %v1358_v50 = vmul.f32 %v5309_v27, %v5309_v27  ;;  %v1481_v51 = vsub.f32 %v5291_v22, %v5838_v58 }
 0x1a9   :  { %6012 = vst [vmem:[#allocation6_spill] sm:$0xff] %v5315_v5  ;;  %v5327_v18 = vsub.f32 %v1355_v42, %v5312_v60  ;;  %v1357_v46 = vmul.f32 %v5315_v5, %v5315_v5  ;;  %v3463_v25 = vpop.f32.mrb[8].mxu0  ;;  %3505 = vmatprep.mubr.f32.mxu1 %v1452_v52  ;;  %v1471_v16 = vsub.f32 %v5299_v47, %v5843_v3  ;;  %v6017_v5 = vld [vmem:[#allocation27_spill] sm:$0xff] }
 0x1aa   :  { %v5334_v19 = vand.u32 4294901760, %v1358_v50  ;;  %v5337_v45 = vsub.f32 %v6013_v62, %v3463_v25  ;;  %v1289_v56 = vpop.f32.mrb[9].mxu0  ;;  %3506 = vmatmul.mubr.f32.vlgmr.msra.gmra.mrb[0].mxu1 %v1462_v36  ;;  %v5847_v58 = vand.u32 4294901760, %v5319_v63  ;;  %v1482_v62 = vand.u32 4294901760, %v1481_v51  ;;  %v6018_v36 = vld [vmem:[#allocation30_spill] sm:$0xff]  ;;  %v6019_v51 = vld [vmem:[#allocation33_spill] sm:$0xff] }
 0x1ab   :  { %v5340_v42 = vand.u32 4294901760, %v1357_v46  ;;  %v5343_v27 = vsub.f32 %v6015_v15, %v1289_v56  ;;  %4036 = vmatpush3.bf16.msra.mxu1 %v6017_v5  ;;  %v1472_v52 = vand.u32 4294901760, %v1471_v16  ;;  %v5851_v41 = vand.u32 4294901760, %v5327_v18 }
 0x1ac   :  { %6014 = vst [vmem:[#allocation20_spill] sm:$0xff] %v5337_v45  ;;  %v5348_v3 = vsub.f32 %v1358_v50, %v5334_v19  ;;  %v1360_v25 = vmul.f32 %v5337_v45, %v5337_v45  ;;  %4038 = vmatprep.subr.bf16.mxu1 %v6018_v36  ;;  %v1501_v9 = vsub.f32 %v5319_v63, %v5847_v58 }
 0x1ad   :  { %6016 = vst [vmem:[#allocation26_spill] sm:$0xff] %v5343_v27  ;;  %v5357_v56 = vsub.f32 %v1357_v46, %v5340_v42  ;;  %v1359_v15 = vmul.f32 %v5343_v27, %v5343_v27  ;;  %v3466_v5 = vpop.f32.mrb[10].mxu0  ;;  %3508 = vmatprep.mubr.f32.mxu1 %v1472_v52  ;;  %v1491_v50 = vsub.f32 %v5327_v18, %v5851_v41 }
 0x1ae   :  { %v5364_v16 = vand.u32 4294901760, %v1360_v25  ;;  %v5367_v45 = vsub.f32 %v6019_v51, %v3466_v5  ;;  %v1301_v0 = vpop.f32.mrb[11].mxu0  ;;  %3509 = vmatmul.mubr.f32.gmra.mrb[2].mxu1 %v1482_v62  ;;  %v5856_v58 = vand.u32 4294901760, %v5348_v3  ;;  %v1502_v51 = vand.u32 4294901760, %v1501_v9  ;;  %v6023_v62 = vld [vmem:[#allocation36_spill] sm:$0xff]  ;;  %v6024_v9 = vld [vmem:[#allocation37_spill] sm:$0xff] }
 0x1af   :  { %v5370_v46 = vand.u32 4294901760, %v1359_v15  ;;  %v5373_v57 = vsub.f32 %v6021_v61, %v1301_v0  ;;  %4040 = vmatpush3.bf16.msra.mxu1 %v6018_v36  ;;  %v1492_v52 = vand.u32 4294901760, %v1491_v50  ;;  %v5862_v27 = vand.u32 4294901760, %v5357_v56 }
 0x1b0   :  { %6020 = vst [vmem:[#allocation10_spill] sm:$0xff] %v5367_v45  ;;  %v5378_v41 = vsub.f32 %v1360_v25, %v5364_v16  ;;  %v1362_v5 = vmul.f32 %v5367_v45, %v5367_v45  ;;  %4042 = vmatprep.subr.bf16.mxu1 %v6023_v62  ;;  %v1521_v38 = vsub.f32 %v5348_v3, %v5856_v58 }
 0x1b1   :  { %6022 = vst [vmem:[#allocation28_spill] sm:$0xff] %v5373_v57  ;;  %v5387_v61 = vsub.f32 %v1359_v15, %v5370_v46  ;;  %v1361_v0 = vmul.f32 %v5373_v57, %v5373_v57  ;;  %v3469_v36 = vpop.f32.mrb[12].mxu0  ;;  %3511 = vmatprep.mubr.f32.mxu1 %v1492_v52  ;;  %v1511_v25 = vsub.f32 %v5357_v56, %v5862_v27 }
 0x1b2   :  { %v5394_v50 = vand.u32 4294901760, %v1362_v5  ;;  %v5397_v45 = vsub.f32 %v6024_v9, %v3469_v36  ;;  %v1313_v24 = vpop.f32.mrb[13].mxu0  ;;  %3512 = vmatmul.mubr.f32.gmra.mrb[4].mxu1 %v1502_v51  ;;  %v5866_v58 = vand.u32 4294901760, %v5378_v41  ;;  %v1522_v9 = vand.u32 4294901760, %v1521_v38  ;;  %v6028_v38 = vld [vmem:[#allocation39_spill] sm:$0xff] }
 0x1b3   :  { %v5400_v15 = vand.u32 4294901760, %v1361_v0  ;;  %v5403_v2 = vsub.f32 %v6026_v30, %v1313_v24  ;;  %4044 = vmatpush3.bf16.msra.mxu1 %v6023_v62  ;;  %v1512_v52 = vand.u32 4294901760, %v1511_v25  ;;  %v5871_v57 = vand.u32 4294901760, %v5387_v61 }
 0x1b4   :  { %6025 = vst [vmem:[#allocation31_spill] sm:$0xff] %v5397_v45  ;;  %v5408_v27 = vsub.f32 %v1362_v5, %v5394_v50  ;;  %v1364_v36 = vmul.f32 %v5397_v45, %v5397_v45  ;;  %4046 = vmatprep.subr.bf16.mxu1 %v4947_v17  ;;  %v1541_v51 = vsub.f32 %v5378_v41, %v5866_v58 }
 0x1b5   :  { %6027 = vst [vmem:[#allocation12_spill] sm:$0xff] %v5403_v2  ;;  %v5417_v30 = vsub.f32 %v1361_v0, %v5400_v15  ;;  %v1363_v24 = vmul.f32 %v5403_v2, %v5403_v2  ;;  %v3472_v62 = vpop.f32.mrb[14].mxu0  ;;  %3514 = vmatprep.mubr.f32.mxu1 %v1512_v52  ;;  %v1531_v5 = vsub.f32 %v5387_v61, %v5871_v57 }
 0x1b6   :  { %v5424_v25 = vand.u32 4294901760, %v1364_v36  ;;  %v5427_v45 = vsub.f32 %v6028_v38, %v3472_v62  ;;  %v1325_v11 = vpop.f32.mrb[15].mxu0  ;;  %3515 = vmatmul.mubr.f32.gmra.mrb[6].mxu1 %v1522_v9  ;;  %v5872_v58 = vand.u32 4294901760, %v5408_v27  ;;  %v1542_v38 = vand.u32 4294901760, %v1541_v51 }
 0x1b7   :  { %v5430_v0 = vand.u32 4294901760, %v1363_v24  ;;  %v5433_v8 = vsub.f32 %v6030_v4, %v1325_v11  ;;  %4048 = vmatpush3.bf16.msra.mxu1 %v4947_v17  ;;  %v1532_v52 = vand.u32 4294901760, %v1531_v5  ;;  %v5874_v2 = vand.u32 4294901760, %v5417_v30 }
 0x1b8   :  { %6029 = vst [vmem:[#allocation32_spill] sm:$0xff] %v5427_v45  ;;  %v5438_v57 = vsub.f32 %v1364_v36, %v5424_v25  ;;  %v1366_v62 = vmul.f32 %v5427_v45, %v5427_v45  ;;  %4050 = vmatprep.subr.bf16.mxu1 %v4956_v55  ;;  %v1561_v9 = vsub.f32 %v5408_v27, %v5872_v58 }
 0x1b9   :  { %6031 = vst [vmem:[#allocation35_spill] sm:$0xff] %v5433_v8  ;;  %v5447_v4 = vsub.f32 %v1363_v24, %v5430_v0  ;;  %v1365_v17 = vmul.f32 %v5433_v8, %v5433_v8  ;;  %3517 = vmatprep.mubr.f32.mxu1 %v1532_v52  ;;  %v1551_v11 = vsub.f32 %v5417_v30, %v5874_v2 }
 0x1ba   :  { %v5454_v36 = vand.u32 4294901760, %v1366_v62  ;;  %3518 = vmatmul.mubr.f32.gmra.mrb[8].mxu1 %v1542_v38  ;;  %v1580_v51 = vand.u32 4294901760, %v5438_v57  ;;  %v1562_v52 = vand.u32 4294901760, %v1561_v9 }
 0x1bb   :  { %v5457_v5 = vand.u32 4294901760, %v1365_v17  ;;  %4052 = vmatpush3.bf16.msra.mxu1 %v4956_v55  ;;  %v1552_v58 = vand.u32 4294901760, %v1551_v11  ;;  %v1570_v24 = vand.u32 4294901760, %v5447_v4 }
 0x1bc   :  { %v5462_v45 = vsub.f32 %v1366_v62, %v5454_v36  ;;  %4054 = vmatprep.subr.bf16.mxu1 %v5026_v6  ;;  %v1581_v2 = vsub.f32 %v5438_v57, %v1580_v51 }
 0x1bd   :  { %v5469_v38 = vsub.f32 %v1365_v17, %v5457_v5  ;;  %3520 = vmatprep.mubr.f32.mxu1 %v1552_v58  ;;  %v1571_v55 = vsub.f32 %v5447_v4, %v1570_v24 }
 0x1be   :  { %3521 = vmatmul.mubr.f32.gmra.mrb[10].mxu1 %v1562_v52  ;;  %v1600_v11 = vand.u32 4294901760, %v5462_v45  ;;  %v1582_v8 = vand.u32 4294901760, %v1581_v2  ;;  %v6032_v2 = vand.u32 4294901760, %v5274_v37 }
 0x1bf   :  { %4056 = vmatpush3.bf16.msra.mxu1 %v5026_v6  ;;  %v1572_v62 = vand.u32 4294901760, %v1571_v55  ;;  %v1590_v9 = vand.u32 4294901760, %v5469_v38 }
 0x1c0   :  { %4058 = vmatprep.subr.bf16.mxu1 %v5044_v14  ;;  %v1601_v17 = vsub.f32 %v5462_v45, %v1600_v11 }
 0x1c1   :  { %3523 = vmatprep.mubr.f32.mxu1 %v1572_v62  ;;  %v1591_v58 = vsub.f32 %v5469_v38, %v1590_v9 }
 0x1c2   :  { %3524 = vmatmul.mubr.f32.gmra.mrb[12].mxu1 %v1582_v8  ;;  %v1602_v6 = vand.u32 4294901760, %v1601_v17  ;;  %v6045_v8 = vand.u32 4294901760, %v5417_v30 }
 0x1c3   :  { %4060 = vmatpush3.bf16.msra.mxu1 %v5044_v14  ;;  %v1592_v52 = vand.u32 4294901760, %v1591_v58  ;;  %v6033_v14 = vand.u32 4294901760, %v5269_v59 }
 0x1c4   :  { %4062 = vmatprep.subr.bf16.mxu1 %v5051_v35 }
 0x1c5   :  { %3526 = vmatprep.mubr.f32.mxu1 %v1592_v52 }
 0x1c6   :  { %3527 = vmatmul.mubr.f32.gmra.mrb[14].mxu1 %v1602_v6 }
 0x1c7   :  { %4064 = vmatpush3.bf16.msra.mxu1 %v5051_v35  ;;  %3561 = vmatprep.mubr.f32.mxu1 %v5263_v12  ;;  %v6034_v35 = vand.u32 4294901760, %v5299_v47 }
 0x1c8   :  { %4066 = vmatprep.subr.bf16.mxu1 %v5057_v54 }
 0x1ca   :  { %3562 = vmatmul.mubr.f32.vlgmr.msra.gmra.mrb[0].mxu1 %v5258_v29 }
 0x1cb   :  { %3564 = vmatprep.mubr.f32.mxu1 %v5284_v21  ;;  %4068 = vmatpush3.bf16.msra.mxu1 %v5057_v54  ;;  %v6035_v54 = vand.u32 4294901760, %v5291_v22 }
 0x1cc   :  { %4070 = vmatprep.subr.bf16.mxu1 %v5064_v43 }
 0x1ce   :  { %3565 = vmatmul.mubr.f32.gmra.mrb[2].mxu1 %v5278_v28 }
 0x1cf   :  { %3567 = vmatprep.mubr.f32.mxu1 %v5312_v60  ;;  %4072 = vmatpush3.bf16.msra.mxu1 %v5064_v43  ;;  %v6036_v43 = vand.u32 4294901760, %v5327_v18 }
 0x1d0   :  { %4074 = vmatprep.subr.bf16.mxu1 %v5072_v33 }
 0x1d2   :  { %3568 = vmatmul.mubr.f32.gmra.mrb[4].mxu1 %v5306_v39 }
 0x1d3   :  { %3570 = vmatprep.mubr.f32.mxu1 %v5340_v42  ;;  %4076 = vmatpush3.bf16.msra.mxu1 %v5072_v33  ;;  %v6037_v33 = vld [vmem:[#allocation42_spill] sm:$0xff] }
 0x1d4   :  { %4078 = vmatprep.subr.bf16.mxu1 %v5080_v34 }
 0x1d6   :  { %3571 = vmatmul.mubr.f32.gmra.mrb[6].mxu1 %v5334_v19 }
 0x1d7   :  { %3573 = vmatprep.mubr.f32.mxu1 %v5370_v46  ;;  %4080 = vmatpush3.bf16.msra.mxu1 %v5080_v34  ;;  %v6038_v34 = vand.u32 4294901760, %v5319_v63 }
 0x1d8   :  { %4082 = vmatprep.subr.bf16.mxu1 %v5088_v40 }
 0x1da   :  { %3574 = vmatmul.mubr.f32.gmra.mrb[8].mxu1 %v5364_v16 }
 0x1db   :  { %3576 = vmatprep.mubr.f32.mxu1 %v5400_v15  ;;  %4084 = vmatpush3.bf16.msra.mxu1 %v5088_v40  ;;  %v6039_v40 = vand.u32 4294901760, %v5357_v56 }
 0x1dc   :  { %4086 = vmatprep.subr.bf16.mxu1 %v5096_v49 }
 0x1de   :  { %3577 = vmatmul.mubr.f32.gmra.mrb[10].mxu1 %v5394_v50 }
 0x1df   :  { %3579 = vmatprep.mubr.f32.mxu1 %v5430_v0  ;;  %4088 = vmatpush3.bf16.msra.mxu1 %v5096_v49  ;;  %v6040_v49 = vld [vmem:[#allocation43_spill] sm:$0xff] }
 0x1e0   :  { %4090 = vmatprep.subr.bf16.mxu1 %v5104_v53 }
 0x1e2   :  { %3580 = vmatmul.mubr.f32.gmra.mrb[12].mxu1 %v5424_v25 }
 0x1e3   :  { %3582 = vmatprep.mubr.f32.mxu1 %v5457_v5  ;;  %4092 = vmatpush3.bf16.msra.mxu1 %v5104_v53  ;;  %v6041_v53 = vand.u32 4294901760, %v5348_v3 }
 0x1e4   :  { %4094 = vmatprep.subr.bf16.mxu1 %v5112_v26 }
 0x1e6   :  { %3583 = vmatmul.mubr.f32.gmra.mrb[14].mxu1 %v5454_v36 }
 0x1e7   :  { %4096 = vmatpush3.bf16.msra.mxu1 %v5112_v26  ;;  %3617 = vmatprep.mubr.f32.mxu1 %v5274_v37  ;;  %v6042_v26 = vand.u32 4294901760, %v5387_v61  ;;  %v6047_v37 = vand.u32 4294901760, %v5408_v27 }
 0x1e8   :  { %4098 = vmatprep.subr.bf16.mxu1 %v5960_v44 }
 0x1ea   :  { %3618 = vmatmul.mubr.f32.vlgmr.msra.gmra.mrb[0].mxu1 %v5269_v59  ;;  %v6046_v59 = vld [vmem:[#allocation45_spill] sm:$0xff] }
 0x1eb   :  { %3620 = vmatprep.mubr.f32.mxu1 %v5299_v47  ;;  %4100 = vmatpush3.bf16.msra.mxu1 %v5960_v44 }
 0x1ec   :  { %4102 = vmatprep.subr.bf16.mxu1 %v5963_v48 }
 0x1ee   :  { %3621 = vmatmul.mubr.f32.gmra.mrb[2].mxu1 %v5291_v22  ;;  %v6048_v22 = vld [vmem:[#allocation46_spill] sm:$0xff] }
 0x1ef   :  { %3623 = vmatprep.mubr.f32.mxu1 %v5327_v18  ;;  %4104 = vmatpush3.bf16.msra.mxu1 %v5963_v48 }
 0x1f0   :  { %4106 = vmatprep.subr.bf16.mxu1 %v5966_v31 }
 0x1f2   :  { %3624 = vmatmul.mubr.f32.gmra.mrb[4].mxu1 %v5319_v63  ;;  %v6050_v63 = vld [vmem:[#allocation7_spill] sm:$0xff] }
 0x1f3   :  { %3626 = vmatprep.mubr.f32.mxu1 %v5357_v56  ;;  %4108 = vmatpush3.bf16.msra.mxu1 %v5966_v31 }
 0x1f4   :  { %4110 = vmatprep.subr.bf16.mxu1 %v5969_v20 }
 0x1f6   :  { %3627 = vmatmul.mubr.f32.gmra.mrb[6].mxu1 %v5348_v3 }
 0x1f7   :  { %3629 = vmatprep.mubr.f32.mxu1 %v5387_v61  ;;  %4112 = vmatpush3.bf16.msra.mxu1 %v5969_v20 }
 0x1f8   :  { %4114 = vmatprep.subr.bf16.mxu1 %v5972_v1 }
 0x1fa   :  { %3630 = vmatmul.mubr.f32.gmra.mrb[8].mxu1 %v5378_v41 }
 0x1fb   :  { %3632 = vmatprep.mubr.f32.mxu1 %v5417_v30  ;;  %4116 = vmatpush3.bf16.msra.mxu1 %v5972_v1 }
 0x1fc   :  { %4118 = vmatprep.subr.bf16.mxu1 %v5975_v7 }
 0x1fe   :  { %3633 = vmatmul.mubr.f32.gmra.mrb[10].mxu1 %v5408_v27 }
 0x1ff   :  { %3635 = vmatprep.mubr.f32.mxu1 %v5447_v4  ;;  %4120 = vmatpush3.bf16.msra.mxu1 %v5975_v7  ;;  %v6052_v4 = vld [vmem:[#allocation11_spill] sm:$0xff] }
 0x200   :  { %4122 = vmatprep.subr.bf16.mxu1 %v5976_v13 }
 0x202   :  { %3636 = vmatmul.mubr.f32.gmra.mrb[12].mxu1 %v5438_v57 }
 0x203   :  { %3638 = vmatprep.mubr.f32.mxu1 %v5469_v38  ;;  %4124 = vmatpush3.bf16.msra.mxu1 %v5976_v13 }
 0x204   :  { %4126 = vmatprep.subr.bf16.mxu1 %v5977_v10 }
 0x206   :  { %3639 = vmatmul.mubr.f32.gmra.mrb[14].mxu1 %v5462_v45  ;;  %v5656_v45 = vld [vmem:[%s5756_s2] ss:$0 sm:$0xff] }
 0x207   :  { %4128 = vmatpush3.bf16.msra.mxu1 %v5977_v10  ;;  %3673 = vmatprep.mubr.f32.mxu1 %v6032_v2  ;;  %v6054_v2 = vld [vmem:[#allocation3_spill] sm:$0xff] }
 0x208   :  { %4130 = vmatprep.subr.bf16.mxu1 %v5979_v23 }
 0x20a   :  { %3674 = vmatmul.mubr.f32.vlgmr.msra.gmra.mrb[0].mxu1 %v6033_v14 }
 0x20b   :  { %3676 = vmatprep.mubr.f32.mxu1 %v6034_v35  ;;  %4132 = vmatpush3.bf16.msra.mxu1 %v5979_v23  ;;  %v6044_v23 = vand.u32 4294901760, %v5378_v41  ;;  %v6049_v41 = vld [vmem:[#allocation47_spill] sm:$0xff] }
 0x20c   :  { %4134 = vmatprep.subr.bf16.mxu1 %v5982_v32 }
 0x20e   :  { %3677 = vmatmul.mubr.f32.gmra.mrb[2].mxu1 %v6035_v54 }
 0x20f   :  { %3679 = vmatprep.mubr.f32.mxu1 %v6036_v43  ;;  %4136 = vmatpush3.bf16.msra.mxu1 %v5982_v32  ;;  %v6043_v32 = vld [vmem:[#allocation44_spill] sm:$0xff] }
 0x210   :  { %4138 = vmatprep.subr.bf16.mxu1 %v6037_v33  ;;  %v6055_v43 = vld [vmem:[#allocation16_spill] sm:$0xff] }
 0x212   :  { %3680 = vmatmul.mubr.f32.gmra.mrb[4].mxu1 %v6038_v34 }
 0x213   :  { %3682 = vmatprep.mubr.f32.mxu1 %v6039_v40  ;;  %4140 = vmatpush3.bf16.msra.mxu1 %v6037_v33 }
 0x214   :  { %4142 = vmatprep.subr.bf16.mxu1 %v6040_v49 }
 0x216   :  { %3683 = vmatmul.mubr.f32.gmra.mrb[6].mxu1 %v6041_v53 }
 0x217   :  { %3685 = vmatprep.mubr.f32.mxu1 %v6042_v26  ;;  %4144 = vmatpush3.bf16.msra.mxu1 %v6040_v49 }
 0x218   :  { %4146 = vmatprep.subr.bf16.mxu1 %v6043_v32 }
 0x21a   :  { %3686 = vmatmul.mubr.f32.gmra.mrb[8].mxu1 %v6044_v23 }
 0x21b   :  { %3688 = vmatprep.mubr.f32.mxu1 %v6045_v8  ;;  %4148 = vmatpush3.bf16.msra.mxu1 %v6043_v32 }
 0x21c   :  { %4150 = vmatprep.subr.bf16.mxu1 %v6046_v59 }
 0x21e   :  { %3689 = vmatmul.mubr.f32.gmra.mrb[10].mxu1 %v6047_v37 }
 0x21f   :  { %3691 = vmatprep.mubr.f32.mxu1 %v1570_v24  ;;  %4152 = vmatpush3.bf16.msra.mxu1 %v6046_v59  ;;  %v6053_v24 = vld [vmem:[#allocation15_spill] sm:$0xff] }
 0x220   :  { %4154 = vmatprep.subr.bf16.mxu1 %v6048_v22  ;;  %v6056_v59 = vld [vmem:[#allocation19_spill] sm:$0xff] }
 0x222   :  { %3692 = vmatmul.mubr.f32.gmra.mrb[12].mxu1 %v1580_v51 }
 0x223   :  { %3694 = vmatprep.mubr.f32.mxu1 %v1590_v9  ;;  %4156 = vmatpush3.bf16.msra.mxu1 %v6048_v22 }
 0x224   :  { %4158 = vmatprep.subr.bf16.mxu1 %v6049_v41 }
 0x226   :  { %3695 = vmatmul.mubr.f32.gmra.mrb[14].mxu1 %v1600_v11 }
 0x227   :  { %4160 = vmatpush3.bf16.msra.mxu1 %v6049_v41  ;;  %3729 = vmatprep.mubr.f32.mxu1 %v5263_v12 }
 0x228   :  { %4162 = vmatprep.subr.bf16.mxu1 %v5960_v44 }
 0x22a   :  { %3730 = vmatmul.mubr.f32.vlgmr.msra.gmra.mrb[0].mxu1 %v5258_v29 }
 0x22b   :  { %3732 = vmatprep.mubr.f32.mxu1 %v5284_v21  ;;  %4164 = vmatpush3.bf16.msra.mxu1 %v5960_v44 }
 0x22c   :  { %4166 = vmatprep.subr.bf16.mxu1 %v5963_v48 }
 0x22e   :  { %3733 = vmatmul.mubr.f32.gmra.mrb[2].mxu1 %v5278_v28 }
 0x22f   :  { %3735 = vmatprep.mubr.f32.mxu1 %v5312_v60  ;;  %4168 = vmatpush3.bf16.msra.mxu1 %v5963_v48 }
 0x230   :  { %4170 = vmatprep.subr.bf16.mxu1 %v5966_v31 }
 0x232   :  { %3736 = vmatmul.mubr.f32.gmra.mrb[4].mxu1 %v5306_v39 }
 0x233   :  { %3738 = vmatprep.mubr.f32.mxu1 %v5340_v42  ;;  %4172 = vmatpush3.bf16.msra.mxu1 %v5966_v31 }
 0x234   :  { %4174 = vmatprep.subr.bf16.mxu1 %v5969_v20 }
 0x236   :  { %3739 = vmatmul.mubr.f32.gmra.mrb[6].mxu1 %v5334_v19 }
 0x237   :  { %3741 = vmatprep.mubr.f32.mxu1 %v5370_v46  ;;  %4176 = vmatpush3.bf16.msra.mxu1 %v5969_v20 }
 0x238   :  { %4178 = vmatprep.subr.bf16.mxu1 %v5972_v1 }
 0x23a   :  { %3742 = vmatmul.mubr.f32.gmra.mrb[8].mxu1 %v5364_v16 }
 0x23b   :  { %3744 = vmatprep.mubr.f32.mxu1 %v5400_v15  ;;  %4180 = vmatpush3.bf16.msra.mxu1 %v5972_v1 }
 0x23c   :  { %4182 = vmatprep.subr.bf16.mxu1 %v5975_v7 }
 0x23e   :  { %3745 = vmatmul.mubr.f32.gmra.mrb[10].mxu1 %v5394_v50 }
 0x23f   :  { %3747 = vmatprep.mubr.f32.mxu1 %v5430_v0  ;;  %4184 = vmatpush3.bf16.msra.mxu1 %v5975_v7 }
 0x240   :  { %4186 = vmatprep.subr.bf16.mxu1 %v5976_v13 }
 0x242   :  { %3748 = vmatmul.mubr.f32.gmra.mrb[12].mxu1 %v5424_v25 }
 0x243   :  { %3750 = vmatprep.mubr.f32.mxu1 %v5457_v5  ;;  %4188 = vmatpush3.bf16.msra.mxu1 %v5976_v13 }
 0x244   :  { %4190 = vmatprep.subr.bf16.mxu1 %v5977_v10 }
 0x246   :  { %3751 = vmatmul.mubr.f32.gmra.mrb[14].mxu1 %v5454_v36 }
 0x247   :  { %4192 = vmatpush3.bf16.msra.mxu1 %v5977_v10  ;;  %3785 = vmatprep.mubr.f32.mxu1 %v5263_v12 }
 0x24a   :  { %3786 = vmatmul.mubr.f32.vlgmr.msra.gmra.mrb[0].mxu1 %v5258_v29 }
 0x24b   :  { %3788 = vmatprep.mubr.f32.mxu1 %v5284_v21 }
 0x24e   :  { %3789 = vmatmul.mubr.f32.gmra.mrb[2].mxu1 %v5278_v28 }
 0x24f   :  { %3791 = vmatprep.mubr.f32.mxu1 %v5312_v60 }
 0x252   :  { %3792 = vmatmul.mubr.f32.gmra.mrb[4].mxu1 %v5306_v39  ;;  %v5650_v39 = vld [vmem:[%s5755_s1] ss:$0 sm:$0xff] }
 0x253   :  { %3794 = vmatprep.mubr.f32.mxu1 %v5340_v42  ;;  %v6051_v42 = vld [vmem:[#allocation2_spill] sm:$0xff] }
 0x256   :  { %3795 = vmatmul.mubr.f32.gmra.mrb[6].mxu1 %v5334_v19 }
 0x257   :  { %3797 = vmatprep.mubr.f32.mxu1 %v5370_v46 }
 0x25a   :  { %3798 = vmatmul.mubr.f32.gmra.mrb[8].mxu1 %v5364_v16 }
 0x25b   :  { %3800 = vmatprep.mubr.f32.mxu1 %v5400_v15 }
 0x25e   :  { %3801 = vmatmul.mubr.f32.gmra.mrb[10].mxu1 %v5394_v50 }
 0x25f   :  { %3803 = vmatprep.mubr.f32.mxu1 %v5430_v0 }
 0x262   :  { %3804 = vmatmul.mubr.f32.gmra.mrb[12].mxu1 %v5424_v25 }
 0x263   :  { %3806 = vmatprep.mubr.f32.mxu1 %v5457_v5 }
 0x266   :  { %3807 = vmatmul.mubr.f32.gmra.mrb[14].mxu1 %v5454_v36 }
 0x31d   :  { %v3787_v44 = vpop.f32.mrb[0].mxu1 }
 0x31e   :  { %v4193_v48 = vadd.f32 1e-05, %v3787_v44  ;;  %v2559_v31 = vpop.f32.mrb[1].mxu1  ;;  %v6057_v44 = vld [vmem:[#allocation6_spill] sm:$0xff] }
 0x31f   :  { %v4194_v20 = vadd.f32 1e-05, %v2559_v31 }
 0x320   :  { %4369 = vrsqrt.f32 %v4193_v48 }
 0x321   :  { %4371 = vrsqrt.f32 %v4194_v20  ;;  %v3790_v1 = vpop.f32.mrb[2].mxu1 }
 0x322   :  { %v4195_v7 = vadd.f32 1e-05, %v3790_v1  ;;  %v2571_v13 = vpop.f32.mrb[3].mxu1 }
 0x323   :  { %v4196_v10 = vadd.f32 1e-05, %v2571_v13 }
 0x324   :  { %4373 = vrsqrt.f32 %v4195_v7 }
 0x325   :  { %4375 = vrsqrt.f32 %v4196_v10  ;;  %v3793_v57 = vpop.f32.mrb[4].mxu1 }
 0x326   :  { %v4197_v29 = vadd.f32 1e-05, %v3793_v57  ;;  %v2583_v12 = vpop.f32.mrb[5].mxu1 }
 0x327   :  { %v4198_v28 = vadd.f32 1e-05, %v2583_v12  ;;  %v6058_v12 = vld [vmem:[#allocation20_spill] sm:$0xff] }
 0x328   :  { %4377 = vrsqrt.f32 %v4197_v29 }
 0x329   :  { %4379 = vrsqrt.f32 %v4198_v28  ;;  %v3796_v21 = vpop.f32.mrb[6].mxu1 }
 0x32a   :  { %v4370_v47 = vpop.eup %4369  ;;  %v4199_v27 = vadd.f32 1e-05, %v3796_v21  ;;  %v2595_v60 = vpop.f32.mrb[7].mxu1 }
 0x32b   :  { %v4372_v3 = vpop.eup %4371  ;;  %v2670_v18 = vmul.f32 %v4370_v47, %v6050_v63  ;;  %v4200_v19 = vadd.f32 1e-05, %v2595_v60 }
 0x32c   :  { %v2669_v56 = vmul.f32 %v4372_v3, %v6051_v42  ;;  %4381 = vrsqrt.f32 %v4199_v27  ;;  %v6059_v27 = vld [vmem:[#allocation26_spill] sm:$0xff] }
 0x32d   :  { %v2694_v16 = vmul.f32 %v5650_v39, %v2670_v18  ;;  %4383 = vrsqrt.f32 %v4200_v19  ;;  %v3799_v46 = vpop.f32.mrb[8].mxu1 }
 0x32e   :  { %v4374_v61 = vpop.eup %4373  ;;  %v2693_v50 = vmul.f32 %v5650_v39, %v2669_v56  ;;  %v4201_v15 = vadd.f32 1e-05, %v3799_v46  ;;  %v2607_v30 = vpop.f32.mrb[9].mxu1  ;;  %v6060_v56 = vld [vmem:[#allocation10_spill] sm:$0xff] }
 0x32f   :  { %v4376_v25 = vpop.eup %4375  ;;  %v2716_v0 = vadd.f32 %v5656_v45, %v2694_v16  ;;  %v2672_v36 = vmul.f32 %v4374_v61, %v6052_v4  ;;  %v4202_v51 = vadd.f32 1e-05, %v2607_v30  ;;  %v6061_v61 = vld [vmem:[#allocation28_spill] sm:$0xff] }
 0x330   :  { %v2715_v5 = vadd.f32 %v5656_v45, %v2693_v50  ;;  %v2671_v38 = vmul.f32 %v4376_v25, %v6053_v24  ;;  %4385 = vrsqrt.f32 %v4201_v15  ;;  %v6063_v24 = vld [vmem:[#allocation12_spill] sm:$0xff] }
 0x331   :  { %2732 = vst [vmem:[%s5757_s4 + $0x8] sm:$0xff] %v2716_v0  ;;  %v2696_v55 = vmul.f32 %v5650_v39, %v2672_v36  ;;  %4387 = vrsqrt.f32 %v4202_v51  ;;  %v3802_v11 = vpop.f32.mrb[10].mxu1  ;;  %v6062_v36 = vld [vmem:[#allocation31_spill] sm:$0xff] }
 0x332   :  { %v4378_v62 = vpop.eup %4377  ;;  %2731 = vst [vmem:[%s5757_s4] sm:$0xff] %v2715_v5  ;;  %v2695_v9 = vmul.f32 %v5650_v39, %v2671_v38  ;;  %v4203_v17 = vadd.f32 1e-05, %v3802_v11  ;;  %v2619_v58 = vpop.f32.mrb[11].mxu1 }
 0x333   :  { %v4380_v52 = vpop.eup %4379  ;;  %v2718_v6 = vadd.f32 %v5656_v45, %v2696_v55  ;;  %v2674_v14 = vmul.f32 %v4378_v62, %v6054_v2  ;;  %v4204_v35 = vadd.f32 1e-05, %v2619_v58  ;;  %v6064_v58 = vld [vmem:[#allocation32_spill] sm:$0xff]  ;;  %v6065_v2 = vld [vmem:[#allocation35_spill] sm:$0xff] }
 0x334   :  { %v2717_v54 = vadd.f32 %v5656_v45, %v2695_v9  ;;  %v2673_v33 = vmul.f32 %v4380_v52, %v6055_v43  ;;  %4389 = vrsqrt.f32 %v4203_v17 }
 0x335   :  { %2734 = vst [vmem:[%s5757_s4 + $0x18] sm:$0xff] %v2718_v6  ;;  %v2698_v34 = vmul.f32 %v5650_v39, %v2674_v14  ;;  %4391 = vrsqrt.f32 %v4204_v35  ;;  %v3805_v40 = vpop.f32.mrb[12].mxu1 }
 0x336   :  { %v4382_v49 = vpop.eup %4381  ;;  %2733 = vst [vmem:[%s5757_s4 + $0x10] sm:$0xff] %v2717_v54  ;;  %v2697_v53 = vmul.f32 %v5650_v39, %v2673_v33  ;;  %v4205_v26 = vadd.f32 1e-05, %v3805_v40  ;;  %v2631_v32 = vpop.f32.mrb[13].mxu1 }
 0x337   :  { %v4384_v23 = vpop.eup %4383  ;;  %v2720_v8 = vadd.f32 %v5656_v45, %v2698_v34  ;;  %v2676_v37 = vmul.f32 %v4382_v49, %v6056_v59  ;;  %v4206_v22 = vadd.f32 1e-05, %v2631_v32 }
 0x338   :  { %v2719_v41 = vadd.f32 %v5656_v45, %v2697_v53  ;;  %v2675_v48 = vmul.f32 %v4384_v23, %v6057_v44  ;;  %4393 = vrsqrt.f32 %v4205_v26 }
 0x339   :  { %2736 = vst [vmem:[%s5757_s4 + $0x28] sm:$0xff] %v2720_v8  ;;  %v2700_v31 = vmul.f32 %v5650_v39, %v2676_v37  ;;  %4395 = vrsqrt.f32 %v4206_v22  ;;  %v3808_v20 = vpop.f32.mrb[14].mxu1 }
 0x33a   :  { %v4386_v1 = vpop.eup %4385  ;;  %2735 = vst [vmem:[%s5757_s4 + $0x20] sm:$0xff] %v2719_v41  ;;  %v2699_v7 = vmul.f32 %v5650_v39, %v2675_v48  ;;  %v4207_v13 = vadd.f32 1e-05, %v3808_v20  ;;  %v2643_v10 = vpop.f32.mrb[15].mxu1 }
 0x33b   :  { %v4388_v57 = vpop.eup %4387  ;;  %v2722_v29 = vadd.f32 %v5656_v45, %v2700_v31  ;;  %v2678_v28 = vmul.f32 %v4386_v1, %v6058_v12  ;;  %v4208_v21 = vadd.f32 1e-05, %v2643_v10 }
 0x33c   :  { %v2721_v47 = vadd.f32 %v5656_v45, %v2699_v7  ;;  %v2677_v60 = vmul.f32 %v4388_v57, %v6059_v27  ;;  %4397 = vrsqrt.f32 %v4207_v13 }
 0x33d   :  { %2738 = vst [vmem:[%s5757_s4 + $0x38] sm:$0xff] %v2722_v29  ;;  %v2702_v3 = vmul.f32 %v5650_v39, %v2678_v28  ;;  %4399 = vrsqrt.f32 %v4208_v21 }
 0x33e   :  { %v4390_v63 = vpop.eup %4389  ;;  %2737 = vst [vmem:[%s5757_s4 + $0x30] sm:$0xff] %v2721_v47  ;;  %v2701_v18 = vmul.f32 %v5650_v39, %v2677_v60 }
 0x33f   :  { %v4392_v19 = vpop.eup %4391  ;;  %v2724_v42 = vadd.f32 %v5656_v45, %v2702_v3  ;;  %v2680_v16 = vmul.f32 %v4390_v63, %v6060_v56 }
 0x340   :  { %v2723_v46 = vadd.f32 %v5656_v45, %v2701_v18  ;;  %v2679_v50 = vmul.f32 %v4392_v19, %v6061_v61 }
 0x341   :  { %2740 = vst [vmem:[%s5757_s4 + $0x48] sm:$0xff] %v2724_v42  ;;  %v2704_v15 = vmul.f32 %v5650_v39, %v2680_v16 }
 0x342   :  { %v4394_v30 = vpop.eup %4393  ;;  %2739 = vst [vmem:[%s5757_s4 + $0x40] sm:$0xff] %v2723_v46  ;;  %v2703_v25 = vmul.f32 %v5650_v39, %v2679_v50 }
 0x343   :  { %v4396_v0 = vpop.eup %4395  ;;  %v2726_v4 = vadd.f32 %v5656_v45, %v2704_v15  ;;  %v2682_v51 = vmul.f32 %v4394_v30, %v6062_v36 }
 0x344   :  { %v2725_v5 = vadd.f32 %v5656_v45, %v2703_v25  ;;  %v2681_v38 = vmul.f32 %v4396_v0, %v6063_v24 }
 0x345   :  { %2742 = vst [vmem:[%s5757_s4 + $0x58] sm:$0xff] %v2726_v4  ;;  %v2706_v55 = vmul.f32 %v5650_v39, %v2682_v51 }
 0x346   :  { %v4398_v11 = vpop.eup %4397  ;;  %2741 = vst [vmem:[%s5757_s4 + $0x50] sm:$0xff] %v2725_v5  ;;  %v2705_v62 = vmul.f32 %v5650_v39, %v2681_v38 }
 0x347   :  { %v4400_v9 = vpop.eup %4399  ;;  %v2728_v17 = vadd.f32 %v5656_v45, %v2706_v55  ;;  %v2684_v52 = vmul.f32 %v4398_v11, %v6064_v58 }
 0x348   :  { %v2727_v6 = vadd.f32 %v5656_v45, %v2705_v62  ;;  %v2683_v14 = vmul.f32 %v4400_v9, %v6065_v2 }
 0x349   :  { %2744 = vst [vmem:[%s5757_s4 + $0x68] sm:$0xff] %v2728_v17  ;;  %v2708_v35 = vmul.f32 %v5650_v39, %v2684_v52 }
 0x34a   :  { %2743 = vst [vmem:[%s5757_s4 + $0x60] sm:$0xff] %v2727_v6  ;;  %v2707_v54 = vmul.f32 %v5650_v39, %v2683_v14 }
 0x34b   :  { %v2730_v43 = vadd.f32 %v5656_v45, %v2708_v35 }
 0x34c   :  { %v2729_v33 = vadd.f32 %v5656_v45, %v2707_v54 }
 0x34d   :  { %2746 = vst [vmem:[%s5757_s4 + $0x78] sm:$0xff] %v2730_v43 }
 0x34e   :  { %2745 = vst [vmem:[%s5757_s4 + $0x70] sm:$0xff] %v2729_v33 }

</bundles_post_ra>
